<compile_context>
chip_gen: v6e
topology: v6e:2x2x1
jax: 0.10.0
libtpu: 0.0.40
codegen_flags: <defaults>
</compile_context>

<pallas_src>
import functools
import math

import jax
import jax.numpy as jnp
import numpy as np
from jax.experimental import pallas as pl
from jax.experimental.pallas import tpu as pltpu


# --------------------------- fused encoder kernel ---------------------------

def _layernorm(x, g, b, eps):
    d = x.shape[-1]
    mean = jnp.mean(x, axis=-1, keepdims=True)
    diff = x - mean
    # unbiased variance (torch.std default) and eps added to std, matching the
    # annotated-transformer custom LayerNorm used by this model.
    var = jnp.sum(diff * diff, axis=-1, keepdims=True) * (1.0 / (d - 1))
    inv = pl.reciprocal(jnp.sqrt(var) + eps, approx=True)   # EUP slot, ~free
    return g * diff * inv + b


def _mm(a, w):
    # bf16 MXU inputs, f32 accumulation (fast MXU path on v6e/v7x).  Weights
    # are already bf16 (cast at init), so only the activation is cast here.
    return jnp.dot(a.astype(jnp.bfloat16), w.astype(jnp.bfloat16),
                   preferred_element_type=jnp.float32)


def _encoder_kernel(emb_ref,
                    ln1g_ref, ln1b_ref, wqkv_ref, bqkv_ref, wo_ref, bo_ref,
                    ln2g_ref, ln2b_ref, w1_ref, b1_ref, w2_ref, b2_ref,
                    lnfg_ref, lnfb_ref, fcw_ref, fcb_ref,
                    out_ref, x_scr,
                    *, num_heads, eps):
    l = pl.program_id(1)
    n_layers = pl.num_programs(1)

    @pl.when(l == 0)
    def _():
        x_scr[...] = emb_ref[...]          # load this batch row's embedding

    x = x_scr[...]                         # (S, D) resident activation
    S, D = x.shape
    dk = D // num_heads
    scale = 1.0 / math.sqrt(dk)

    # ---- sublayer 0: x + MHA(LayerNorm(x)) --------------------------------
    xn = _layernorm(x, ln1g_ref[...], ln1b_ref[...], eps)
    qkv = _mm(xn, wqkv_ref[...]) + bqkv_ref[...]         # (S, 3D) fused Q|K|V
    q, k, v = qkv[:, :D], qkv[:, D:2 * D], qkv[:, 2 * D:]

    heads = []
    for hh in range(num_heads):                          # static unroll, h=4
        sl = slice(hh * dk, (hh + 1) * dk)
        qh, kh, vh = q[:, sl], k[:, sl], v[:, sl]
        s = _mm(qh, kh.T) * scale                        # (S, S)
        s = s - jnp.max(s, axis=-1, keepdims=True)
        p = jnp.exp(s)
        p = p * pl.reciprocal(jnp.sum(p, axis=-1, keepdims=True), approx=True)
        heads.append(_mm(p, vh))                         # (S, dk)
    attn = jnp.concatenate(heads, axis=-1)               # (S, D)

    x = x + _mm(attn, wo_ref[...]) + bo_ref[...]         # residual folded in

    # ---- sublayer 1: x + FFN(LayerNorm(x)) --------------------------------
    xn2 = _layernorm(x, ln2g_ref[...], ln2b_ref[...], eps)
    f = jnp.maximum(_mm(xn2, w1_ref[...]) + b1_ref[...], 0.0)
    x = x + _mm(f, w2_ref[...]) + b2_ref[...]            # residual folded in

    x_scr[...] = x

    # ---- final encoder LN + classifier head: last layer, last token only --
    @pl.when(l == n_layers - 1)
    def _():
        feat = x[S - 1:S, :]                              # (1, D) last token
        feat = _layernorm(feat, lnfg_ref[...], lnfb_ref[...], eps)
        logits = _mm(feat, fcw_ref[...]) + fcb_ref[...]   # (1, out)
        logits = logits - jnp.max(logits, axis=-1, keepdims=True)
        e = jnp.exp(logits)
        # exact divide here so probabilities sum to 1 to tight tolerance.
        out_ref[...] = (e / jnp.sum(e, axis=-1, keepdims=True)).astype(out_ref.dtype)


def encoder_classifier(emb, params, *, num_heads, eps=1e-6):
    """emb: (B, S, D) f32 -> softmax class probabilities (B, out_size)."""
    B, S, D = emb.shape
    N = params["wqkv"].shape[0]
    F = params["w1"].shape[2]
    C = params["fc_w"].shape[1]

    def layer_spec(r, c):      # per-layer stacked weight, indexed by layer id
        return pl.BlockSpec((None, r, c), lambda b, l: (l, 0, 0))

    def shared_spec(r, c):     # weights shared across the whole grid
        return pl.BlockSpec((r, c), lambda b, l: (0, 0))

    # TODO(synk): at production sizes replace full-slab blocks with row/col
    # tiles (128-multiples), block the batch axis (several rows per grid step
    # to amortize weight DMA), and set vmem_limit_bytes; trivial at these
    # shapes.
    out = pl.pallas_call(
        functools.partial(_encoder_kernel, num_heads=num_heads, eps=eps),
        out_shape=jax.ShapeDtypeStruct((B, 1, C), jnp.float32),
        grid_spec=pltpu.PrefetchScalarGridSpec(
            num_scalar_prefetch=0,
            grid=(B, N),
            in_specs=[
                pl.BlockSpec((None, S, D), lambda b, l: (b, 0, 0)),  # emb
                layer_spec(1, D), layer_spec(1, D),                  # ln1 g/b
                layer_spec(D, 3 * D), layer_spec(1, 3 * D),          # wqkv/bqkv
                layer_spec(D, D), layer_spec(1, D),                  # wo/bo
                layer_spec(1, D), layer_spec(1, D),                  # ln2 g/b
                layer_spec(D, F), layer_spec(1, F),                  # w1/b1
                layer_spec(F, D), layer_spec(1, D),                  # w2/b2
                shared_spec(1, D), shared_spec(1, D),                # final ln
                shared_spec(D, C), shared_spec(1, C),                # fc w/b
            ],
            out_specs=pl.BlockSpec((None, 1, C), lambda b, l: (b, 0, 0)),
            scratch_shapes=[pltpu.VMEM((S, D), jnp.float32)],
        ),
        compiler_params=pltpu.CompilerParams(
            dimension_semantics=("parallel", "arbitrary")),
    )(emb,
      params["ln1_g"], params["ln1_b"], params["wqkv"], params["bqkv"],
      params["wo"], params["bo"], params["ln2_g"], params["ln2_b"],
      params["w1"], params["b1"], params["w2"], params["b2"],
      params["ln_f_g"], params["ln_f_b"], params["fc_w"], params["fc_b"])
    return out[:, 0, :]


# ------------------------------- JAX glue -----------------------------------

def positional_encoding(max_len, d_model):
    pe = np.zeros((max_len, d_model), dtype=np.float32)
    position = np.arange(0, max_len, dtype=np.float32)[:, None]
    div_term = np.exp(np.arange(0, d_model, 2, dtype=np.float32)
                      * -(math.log(10000.0) / d_model))
    pe[:, 0::2] = np.sin(position * div_term)
    pe[:, 1::2] = np.cos(position * div_term)
    return jnp.asarray(pe)


def init_params(key, cfg, vocab, max_len=512):
    D, F = cfg["d_model"], cfg["d_ff"]
    N, C = cfg["N"], cfg["output_size"]
    keys = iter(jax.random.split(key, 8 * N + 8))
    nrm = lambda shape: (0.02 * jax.random.normal(next(keys), shape)).astype(jnp.float32)
    ones = lambda shape: jnp.ones(shape, jnp.float32)
    zeros = lambda shape: jnp.zeros(shape, jnp.float32)
    # Matmul weight stacks live in bf16: halves per-grid-step weight DMA and
    # removes in-loop casts; MXU accumulates in f32.
    stack16 = lambda shape: jnp.stack(
        [nrm(shape) for _ in range(N)], axis=0).astype(jnp.bfloat16)

    return {
        "emb": nrm((vocab, D)),
        "pe": positional_encoding(max_len, D),            # built once, hoisted
        "ln1_g": ones((N, 1, D)), "ln1_b": zeros((N, 1, D)),
        "wqkv": stack16((D, 3 * D)), "bqkv": zeros((N, 1, 3 * D)),  # [Wq|Wk|Wv]
        "wo": stack16((D, D)), "bo": zeros((N, 1, D)),
        "ln2_g": ones((N, 1, D)), "ln2_b": zeros((N, 1, D)),
        "w1": stack16((D, F)), "b1": zeros((N, 1, F)),
        "w2": stack16((F, D)), "b2": zeros((N, 1, D)),
        "ln_f_g": ones((1, D)), "ln_f_b": zeros((1, D)),
        "fc_w": nrm((D, C)).astype(jnp.bfloat16), "fc_b": zeros((1, C)),
    }


@functools.partial(jax.jit, static_argnames=("num_heads",))
def transformer_forward(params, x_ids, *, num_heads):
    B, S = x_ids.shape
    D = params["emb"].shape[1]
    # src_embed: Embedding(x) * sqrt(d_model) + PositionalEncoding (dropout=id)
    # TODO(synk): token-id embedding gather kept as JAX glue (a data-dependent
    # gather; would need a scalar-prefetch pl.Element BlockSpec to kernelize).
    emb = params["emb"][x_ids] * math.sqrt(D) + params["pe"][None, :S, :]
    return encoder_classifier(emb.astype(jnp.float32), params,
                              num_heads=num_heads)


if __name__ == "__main__":
    cfg = dict(h=4, N=2, d_model=32, d_ff=64, dropout=0.0, output_size=4)
    vocab = 50
    B, S = 2, 8

    root = jax.random.PRNGKey(0)
    k_param, k_input = jax.random.split(root)
    params = init_params(k_param, cfg, vocab)
    x_ids = jax.random.randint(k_input, (B, S), 0, vocab, dtype=jnp.int32)

    out = transformer_forward(params, x_ids, num_heads=cfg["h"])
    out = jax.block_until_ready(out)

    assert out.shape == (B, cfg["output_size"])
    assert bool(jnp.all(jnp.isfinite(out)))
    assert bool(jnp.allclose(jnp.sum(out, axis=-1), 1.0, atol=1e-5))
    print("KERNEL_OK")
</pallas_src>

<mosaic_0001>
module attributes {stable_mosaic.version = 11 : i64} {
  func.func @_encoder_kernel(%arg0: i32, %arg1: i32, %arg2: memref<1x8x32xf32, #tpu.memory_space<vmem>>, %arg3: memref<1x1x32xf32, #tpu.memory_space<vmem>>, %arg4: memref<1x1x32xf32, #tpu.memory_space<vmem>>, %arg5: memref<1x32x96xbf16, #tpu.memory_space<vmem>>, %arg6: memref<1x1x96xf32, #tpu.memory_space<vmem>>, %arg7: memref<1x32x32xbf16, #tpu.memory_space<vmem>>, %arg8: memref<1x1x32xf32, #tpu.memory_space<vmem>>, %arg9: memref<1x1x32xf32, #tpu.memory_space<vmem>>, %arg10: memref<1x1x32xf32, #tpu.memory_space<vmem>>, %arg11: memref<1x32x64xbf16, #tpu.memory_space<vmem>>, %arg12: memref<1x1x64xf32, #tpu.memory_space<vmem>>, %arg13: memref<1x64x32xbf16, #tpu.memory_space<vmem>>, %arg14: memref<1x1x32xf32, #tpu.memory_space<vmem>>, %arg15: memref<1x32xf32, #tpu.memory_space<vmem>>, %arg16: memref<1x32xf32, #tpu.memory_space<vmem>>, %arg17: memref<32x4xbf16, #tpu.memory_space<vmem>>, %arg18: memref<1x4xf32, #tpu.memory_space<vmem>>, %arg19: memref<1x1x4xf32, #tpu.memory_space<vmem>>, %arg20: memref<8x32xf32, #tpu.memory_space<vmem>>) attributes {dimension_semantics = [#tpu.dimension_semantics<parallel>, #tpu.dimension_semantics<arbitrary>], iteration_bounds = array<i64: 2, 2>, scalar_prefetch = 0 : i64, scratch_operands = 1 : i64, tpu.core_type = #tpu.core_type<tc>, window_params = [{transform_indices = @transform_0, window_bounds = array<i64: 1, 8, 32>}, {transform_indices = @transform_1, window_bounds = array<i64: 1, 1, 32>}, {transform_indices = @transform_2, window_bounds = array<i64: 1, 1, 32>}, {transform_indices = @transform_3, window_bounds = array<i64: 1, 32, 96>}, {transform_indices = @transform_4, window_bounds = array<i64: 1, 1, 96>}, {transform_indices = @transform_5, window_bounds = array<i64: 1, 32, 32>}, {transform_indices = @transform_6, window_bounds = array<i64: 1, 1, 32>}, {transform_indices = @transform_7, window_bounds = array<i64: 1, 1, 32>}, {transform_indices = @transform_8, window_bounds = array<i64: 1, 1, 32>}, {transform_indices = @transform_9, window_bounds = array<i64: 1, 32, 64>}, {transform_indices = @transform_10, window_bounds = array<i64: 1, 1, 64>}, {transform_indices = @transform_11, window_bounds = array<i64: 1, 64, 32>}, {transform_indices = @transform_12, window_bounds = array<i64: 1, 1, 32>}, {pipeline_mode = #tpu.pipeline_mode<synchronous>, transform_indices = @transform_13, window_bounds = array<i64: 1, 32>}, {pipeline_mode = #tpu.pipeline_mode<synchronous>, transform_indices = @transform_14, window_bounds = array<i64: 1, 32>}, {pipeline_mode = #tpu.pipeline_mode<synchronous>, transform_indices = @transform_15, window_bounds = array<i64: 32, 4>}, {pipeline_mode = #tpu.pipeline_mode<synchronous>, transform_indices = @transform_16, window_bounds = array<i64: 1, 4>}, {transform_indices = @transform_17, window_bounds = array<i64: 1, 1, 4>}]} {
    %c0_i32 = arith.constant 0 : i32
    %0 = arith.cmpi eq, %arg1, %c0_i32 : i32
    %1 = arith.extui %0 : i1 to i32
    %c0_i32_0 = arith.constant 0 : i32
    %2 = arith.cmpi ne, %1, %c0_i32_0 : i32
    scf.if %2 {
      %c0_75 = arith.constant 0 : index
      %c0_76 = arith.constant 0 : index
      %c0_77 = arith.constant 0 : index
      %186 = vector.load %arg2[%c0_75, %c0_76, %c0_77] : memref<1x8x32xf32, #tpu.memory_space<vmem>>, vector<1x8x32xf32>
      %187 = vector.shape_cast %186 : vector<1x8x32xf32> to vector<8x32xf32>
      %c0_78 = arith.constant 0 : index
      %c0_79 = arith.constant 0 : index
      %188 = vector.load %arg20[%c0_78, %c0_79] : memref<8x32xf32, #tpu.memory_space<vmem>>, vector<8x32xf32>
      tpu.vector_store %arg20[%c0_78, %c0_79], %187 {strides = array<i32>} : memref<8x32xf32, #tpu.memory_space<vmem>>, vector<8x32xf32>,
    } else {
    }
    %c0 = arith.constant 0 : index
    %c0_1 = arith.constant 0 : index
    %3 = vector.load %arg20[%c0, %c0_1] : memref<8x32xf32, #tpu.memory_space<vmem>>, vector<8x32xf32>
    %c0_2 = arith.constant 0 : index
    %c0_3 = arith.constant 0 : index
    %c0_4 = arith.constant 0 : index
    %4 = vector.load %arg3[%c0_2, %c0_3, %c0_4] : memref<1x1x32xf32, #tpu.memory_space<vmem>>, vector<1x1x32xf32>
    %5 = vector.shape_cast %4 : vector<1x1x32xf32> to vector<1x32xf32>
    %c0_5 = arith.constant 0 : index
    %c0_6 = arith.constant 0 : index
    %c0_7 = arith.constant 0 : index
    %6 = vector.load %arg4[%c0_5, %c0_6, %c0_7] : memref<1x1x32xf32, #tpu.memory_space<vmem>>, vector<1x1x32xf32>
    %7 = vector.shape_cast %6 : vector<1x1x32xf32> to vector<1x32xf32>
    %cst = arith.constant dense<0.000000e+00> : vector<8xf32>
    %8 = vector.multi_reduction <add>, %3, %cst [1] : vector<8x32xf32> to vector<8xf32>
    %9 = vector.shape_cast %8 : vector<8xf32> to vector<8x1xf32>
    %cst_8 = arith.constant 3.200000e+01 : f32
    %10 = vector.broadcast %cst_8 : f32 to vector<8x1xf32>
    %11 = arith.divf %9, %10 : vector<8x1xf32>
    %12 = vector.broadcast %11 : vector<8x1xf32> to vector<8x32xf32>
    %13 = arith.subf %3, %12 : vector<8x32xf32>
    %14 = arith.mulf %13, %13 : vector<8x32xf32>
    %cst_9 = arith.constant dense<0.000000e+00> : vector<8xf32>
    %15 = vector.multi_reduction <add>, %14, %cst_9 [1] : vector<8x32xf32> to vector<8xf32>
    %16 = vector.shape_cast %15 : vector<8xf32> to vector<8x1xf32>
    %cst_10 = arith.constant 0.0322580636 : f32
    %17 = vector.broadcast %cst_10 : f32 to vector<8x1xf32>
    %18 = arith.mulf %16, %17 : vector<8x1xf32>
    %19 = math.sqrt %18 : vector<8x1xf32>
    %cst_11 = arith.constant 9.99999997E-7 : f32
    %20 = vector.broadcast %cst_11 : f32 to vector<8x1xf32>
    %21 = arith.addf %19, %20 : vector<8x1xf32>
    %22 = tpu.reciprocal %21 {approx = true} : vector<8x1xf32> -> vector<8x1xf32>
    %23 = vector.broadcast %5 : vector<1x32xf32> to vector<8x32xf32>
    %24 = arith.mulf %23, %13 : vector<8x32xf32>
    %25 = vector.broadcast %22 : vector<8x1xf32> to vector<8x32xf32>
    %26 = arith.mulf %24, %25 : vector<8x32xf32>
    %27 = vector.broadcast %7 : vector<1x32xf32> to vector<8x32xf32>
    %28 = arith.addf %26, %27 : vector<8x32xf32>
    %c0_12 = arith.constant 0 : index
    %c0_13 = arith.constant 0 : index
    %c0_14 = arith.constant 0 : index
    %29 = vector.load %arg5[%c0_12, %c0_13, %c0_14] : memref<1x32x96xbf16, #tpu.memory_space<vmem>>, vector<1x32x96xbf16>
    %30 = vector.shape_cast %29 : vector<1x32x96xbf16> to vector<32x96xbf16>
    %31 = arith.truncf %28 : vector<8x32xf32> to vector<8x32xbf16>
    %cst_15 = arith.constant dense<0.000000e+00> : vector<8x96xf32>
    %32 = tpu.matmul %31, %30, %cst_15 {dimension_numbers = #tpu.dot_dimension_numbers<[1], [0], [0], [1], [0, 0, 1, 1], [], []>} : vector<8x32xbf16>, vector<32x96xbf16>, vector<8x96xf32> -> vector<8x96xf32>
    %c0_16 = arith.constant 0 : index
    %c0_17 = arith.constant 0 : index
    %c0_18 = arith.constant 0 : index
    %33 = vector.load %arg6[%c0_16, %c0_17, %c0_18] : memref<1x1x96xf32, #tpu.memory_space<vmem>>, vector<1x1x96xf32>
    %34 = vector.shape_cast %33 : vector<1x1x96xf32> to vector<1x96xf32>
    %35 = vector.broadcast %34 : vector<1x96xf32> to vector<8x96xf32>
    %36 = arith.addf %32, %35 : vector<8x96xf32>
    %37 = vector.extract_strided_slice %36 {offsets = [0, 0], sizes = [8, 32], strides = [1, 1]} : vector<8x96xf32> to vector<8x32xf32>
    %38 = vector.extract_strided_slice %36 {offsets = [0, 32], sizes = [8, 32], strides = [1, 1]} : vector<8x96xf32> to vector<8x32xf32>
    %39 = vector.extract_strided_slice %36 {offsets = [0, 64], sizes = [8, 32], strides = [1, 1]} : vector<8x96xf32> to vector<8x32xf32>
    %40 = vector.extract_strided_slice %37 {offsets = [0, 0], sizes = [8, 8], strides = [1, 1]} : vector<8x32xf32> to vector<8x8xf32>
    %41 = vector.extract_strided_slice %38 {offsets = [0, 0], sizes = [8, 8], strides = [1, 1]} : vector<8x32xf32> to vector<8x8xf32>
    %42 = vector.extract_strided_slice %39 {offsets = [0, 0], sizes = [8, 8], strides = [1, 1]} : vector<8x32xf32> to vector<8x8xf32>
    %43 = tpu.transpose %41, [1, 0] : vector<8x8xf32> -> vector<8x8xf32>
    %44 = arith.truncf %40 : vector<8x8xf32> to vector<8x8xbf16>
    %45 = arith.truncf %43 : vector<8x8xf32> to vector<8x8xbf16>
    %cst_19 = arith.constant dense<0.000000e+00> : vector<8x8xf32>
    %46 = tpu.matmul %44, %45, %cst_19 {dimension_numbers = #tpu.dot_dimension_numbers<[1], [0], [0], [1], [0, 0, 1, 1], [], []>} : vector<8x8xbf16>, vector<8x8xbf16>, vector<8x8xf32> -> vector<8x8xf32>
    %cst_20 = arith.constant 0.353553385 : f32
    %47 = vector.broadcast %cst_20 : f32 to vector<8x8xf32>
    %48 = arith.mulf %46, %47 : vector<8x8xf32>
    %cst_21 = arith.constant dense<0xFF800000> : vector<8xf32>
    %49 = vector.multi_reduction <maximumf>, %48, %cst_21 [1] : vector<8x8xf32> to vector<8xf32>
    %50 = vector.shape_cast %49 : vector<8xf32> to vector<8x1xf32>
    %51 = vector.broadcast %50 : vector<8x1xf32> to vector<8x8xf32>
    %52 = arith.subf %48, %51 : vector<8x8xf32>
    %53 = math.exp %52 : vector<8x8xf32>
    %cst_22 = arith.constant dense<0.000000e+00> : vector<8xf32>
    %54 = vector.multi_reduction <add>, %53, %cst_22 [1] : vector<8x8xf32> to vector<8xf32>
    %55 = vector.shape_cast %54 : vector<8xf32> to vector<8x1xf32>
    %56 = tpu.reciprocal %55 {approx = true} : vector<8x1xf32> -> vector<8x1xf32>
    %57 = vector.broadcast %56 : vector<8x1xf32> to vector<8x8xf32>
    %58 = arith.mulf %53, %57 : vector<8x8xf32>
    %59 = arith.truncf %58 : vector<8x8xf32> to vector<8x8xbf16>
    %60 = arith.truncf %42 : vector<8x8xf32> to vector<8x8xbf16>
    %cst_23 = arith.constant dense<0.000000e+00> : vector<8x8xf32>
    %61 = tpu.matmul %59, %60, %cst_23 {dimension_numbers = #tpu.dot_dimension_numbers<[1], [0], [0], [1], [0, 0, 1, 1], [], []>} : vector<8x8xbf16>, vector<8x8xbf16>, vector<8x8xf32> -> vector<8x8xf32>
    %62 = vector.extract_strided_slice %37 {offsets = [0, 8], sizes = [8, 8], strides = [1, 1]} : vector<8x32xf32> to vector<8x8xf32>
    %63 = vector.extract_strided_slice %38 {offsets = [0, 8], sizes = [8, 8], strides = [1, 1]} : vector<8x32xf32> to vector<8x8xf32>
    %64 = vector.extract_strided_slice %39 {offsets = [0, 8], sizes = [8, 8], strides = [1, 1]} : vector<8x32xf32> to vector<8x8xf32>
    %65 = tpu.transpose %63, [1, 0] : vector<8x8xf32> -> vector<8x8xf32>
    %66 = arith.truncf %62 : vector<8x8xf32> to vector<8x8xbf16>
    %67 = arith.truncf %65 : vector<8x8xf32> to vector<8x8xbf16>
    %cst_24 = arith.constant dense<0.000000e+00> : vector<8x8xf32>
    %68 = tpu.matmul %66, %67, %cst_24 {dimension_numbers = #tpu.dot_dimension_numbers<[1], [0], [0], [1], [0, 0, 1, 1], [], []>} : vector<8x8xbf16>, vector<8x8xbf16>, vector<8x8xf32> -> vector<8x8xf32>
    %cst_25 = arith.constant 0.353553385 : f32
    %69 = vector.broadcast %cst_25 : f32 to vector<8x8xf32>
    %70 = arith.mulf %68, %69 : vector<8x8xf32>
    %cst_26 = arith.constant dense<0xFF800000> : vector<8xf32>
    %71 = vector.multi_reduction <maximumf>, %70, %cst_26 [1] : vector<8x8xf32> to vector<8xf32>
    %72 = vector.shape_cast %71 : vector<8xf32> to vector<8x1xf32>
    %73 = vector.broadcast %72 : vector<8x1xf32> to vector<8x8xf32>
    %74 = arith.subf %70, %73 : vector<8x8xf32>
    %75 = math.exp %74 : vector<8x8xf32>
    %cst_27 = arith.constant dense<0.000000e+00> : vector<8xf32>
    %76 = vector.multi_reduction <add>, %75, %cst_27 [1] : vector<8x8xf32> to vector<8xf32>
    %77 = vector.shape_cast %76 : vector<8xf32> to vector<8x1xf32>
    %78 = tpu.reciprocal %77 {approx = true} : vector<8x1xf32> -> vector<8x1xf32>
    %79 = vector.broadcast %78 : vector<8x1xf32> to vector<8x8xf32>
    %80 = arith.mulf %75, %79 : vector<8x8xf32>
    %81 = arith.truncf %80 : vector<8x8xf32> to vector<8x8xbf16>
    %82 = arith.truncf %64 : vector<8x8xf32> to vector<8x8xbf16>
    %cst_28 = arith.constant dense<0.000000e+00> : vector<8x8xf32>
    %83 = tpu.matmul %81, %82, %cst_28 {dimension_numbers = #tpu.dot_dimension_numbers<[1], [0], [0], [1], [0, 0, 1, 1], [], []>} : vector<8x8xbf16>, vector<8x8xbf16>, vector<8x8xf32> -> vector<8x8xf32>
    %84 = vector.extract_strided_slice %37 {offsets = [0, 16], sizes = [8, 8], strides = [1, 1]} : vector<8x32xf32> to vector<8x8xf32>
    %85 = vector.extract_strided_slice %38 {offsets = [0, 16], sizes = [8, 8], strides = [1, 1]} : vector<8x32xf32> to vector<8x8xf32>
    %86 = vector.extract_strided_slice %39 {offsets = [0, 16], sizes = [8, 8], strides = [1, 1]} : vector<8x32xf32> to vector<8x8xf32>
    %87 = tpu.transpose %85, [1, 0] : vector<8x8xf32> -> vector<8x8xf32>
    %88 = arith.truncf %84 : vector<8x8xf32> to vector<8x8xbf16>
    %89 = arith.truncf %87 : vector<8x8xf32> to vector<8x8xbf16>
    %cst_29 = arith.constant dense<0.000000e+00> : vector<8x8xf32>
    %90 = tpu.matmul %88, %89, %cst_29 {dimension_numbers = #tpu.dot_dimension_numbers<[1], [0], [0], [1], [0, 0, 1, 1], [], []>} : vector<8x8xbf16>, vector<8x8xbf16>, vector<8x8xf32> -> vector<8x8xf32>
    %cst_30 = arith.constant 0.353553385 : f32
    %91 = vector.broadcast %cst_30 : f32 to vector<8x8xf32>
    %92 = arith.mulf %90, %91 : vector<8x8xf32>
    %cst_31 = arith.constant dense<0xFF800000> : vector<8xf32>
    %93 = vector.multi_reduction <maximumf>, %92, %cst_31 [1] : vector<8x8xf32> to vector<8xf32>
    %94 = vector.shape_cast %93 : vector<8xf32> to vector<8x1xf32>
    %95 = vector.broadcast %94 : vector<8x1xf32> to vector<8x8xf32>
    %96 = arith.subf %92, %95 : vector<8x8xf32>
    %97 = math.exp %96 : vector<8x8xf32>
    %cst_32 = arith.constant dense<0.000000e+00> : vector<8xf32>
    %98 = vector.multi_reduction <add>, %97, %cst_32 [1] : vector<8x8xf32> to vector<8xf32>
    %99 = vector.shape_cast %98 : vector<8xf32> to vector<8x1xf32>
    %100 = tpu.reciprocal %99 {approx = true} : vector<8x1xf32> -> vector<8x1xf32>
    %101 = vector.broadcast %100 : vector<8x1xf32> to vector<8x8xf32>
    %102 = arith.mulf %97, %101 : vector<8x8xf32>
    %103 = arith.truncf %102 : vector<8x8xf32> to vector<8x8xbf16>
    %104 = arith.truncf %86 : vector<8x8xf32> to vector<8x8xbf16>
    %cst_33 = arith.constant dense<0.000000e+00> : vector<8x8xf32>
    %105 = tpu.matmul %103, %104, %cst_33 {dimension_numbers = #tpu.dot_dimension_numbers<[1], [0], [0], [1], [0, 0, 1, 1], [], []>} : vector<8x8xbf16>, vector<8x8xbf16>, vector<8x8xf32> -> vector<8x8xf32>
    %106 = vector.extract_strided_slice %37 {offsets = [0, 24], sizes = [8, 8], strides = [1, 1]} : vector<8x32xf32> to vector<8x8xf32>
    %107 = vector.extract_strided_slice %38 {offsets = [0, 24], sizes = [8, 8], strides = [1, 1]} : vector<8x32xf32> to vector<8x8xf32>
    %108 = vector.extract_strided_slice %39 {offsets = [0, 24], sizes = [8, 8], strides = [1, 1]} : vector<8x32xf32> to vector<8x8xf32>
    %109 = tpu.transpose %107, [1, 0] : vector<8x8xf32> -> vector<8x8xf32>
    %110 = arith.truncf %106 : vector<8x8xf32> to vector<8x8xbf16>
    %111 = arith.truncf %109 : vector<8x8xf32> to vector<8x8xbf16>
    %cst_34 = arith.constant dense<0.000000e+00> : vector<8x8xf32>
    %112 = tpu.matmul %110, %111, %cst_34 {dimension_numbers = #tpu.dot_dimension_numbers<[1], [0], [0], [1], [0, 0, 1, 1], [], []>} : vector<8x8xbf16>, vector<8x8xbf16>, vector<8x8xf32> -> vector<8x8xf32>
    %cst_35 = arith.constant 0.353553385 : f32
    %113 = vector.broadcast %cst_35 : f32 to vector<8x8xf32>
    %114 = arith.mulf %112, %113 : vector<8x8xf32>
    %cst_36 = arith.constant dense<0xFF800000> : vector<8xf32>
    %115 = vector.multi_reduction <maximumf>, %114, %cst_36 [1] : vector<8x8xf32> to vector<8xf32>
    %116 = vector.shape_cast %115 : vector<8xf32> to vector<8x1xf32>
    %117 = vector.broadcast %116 : vector<8x1xf32> to vector<8x8xf32>
    %118 = arith.subf %114, %117 : vector<8x8xf32>
    %119 = math.exp %118 : vector<8x8xf32>
    %cst_37 = arith.constant dense<0.000000e+00> : vector<8xf32>
    %120 = vector.multi_reduction <add>, %119, %cst_37 [1] : vector<8x8xf32> to vector<8xf32>
    %121 = vector.shape_cast %120 : vector<8xf32> to vector<8x1xf32>
    %122 = tpu.reciprocal %121 {approx = true} : vector<8x1xf32> -> vector<8x1xf32>
    %123 = vector.broadcast %122 : vector<8x1xf32> to vector<8x8xf32>
    %124 = arith.mulf %119, %123 : vector<8x8xf32>
    %125 = arith.truncf %124 : vector<8x8xf32> to vector<8x8xbf16>
    %126 = arith.truncf %108 : vector<8x8xf32> to vector<8x8xbf16>
    %cst_38 = arith.constant dense<0.000000e+00> : vector<8x8xf32>
    %127 = tpu.matmul %125, %126, %cst_38 {dimension_numbers = #tpu.dot_dimension_numbers<[1], [0], [0], [1], [0, 0, 1, 1], [], []>} : vector<8x8xbf16>, vector<8x8xbf16>, vector<8x8xf32> -> vector<8x8xf32>
    %128 = tpu.concatenate %61, %83, %105, %127 in 1 : vector<8x8xf32>, vector<8x8xf32>, vector<8x8xf32>, vector<8x8xf32> -> vector<8x32xf32>
    %c0_39 = arith.constant 0 : index
    %c0_40 = arith.constant 0 : index
    %c0_41 = arith.constant 0 : index
    %129 = vector.load %arg7[%c0_39, %c0_40, %c0_41] : memref<1x32x32xbf16, #tpu.memory_space<vmem>>, vector<1x32x32xbf16>
    %130 = vector.shape_cast %129 : vector<1x32x32xbf16> to vector<32x32xbf16>
    %131 = arith.truncf %128 : vector<8x32xf32> to vector<8x32xbf16>
    %cst_42 = arith.constant dense<0.000000e+00> : vector<8x32xf32>
    %132 = tpu.matmul %131, %130, %cst_42 {dimension_numbers = #tpu.dot_dimension_numbers<[1], [0], [0], [1], [0, 0, 1, 1], [], []>} : vector<8x32xbf16>, vector<32x32xbf16>, vector<8x32xf32> -> vector<8x32xf32>
    %133 = arith.addf %3, %132 : vector<8x32xf32>
    %c0_43 = arith.constant 0 : index
    %c0_44 = arith.constant 0 : index
    %c0_45 = arith.constant 0 : index
    %134 = vector.load %arg8[%c0_43, %c0_44, %c0_45] : memref<1x1x32xf32, #tpu.memory_space<vmem>>, vector<1x1x32xf32>
    %135 = vector.shape_cast %134 : vector<1x1x32xf32> to vector<1x32xf32>
    %136 = vector.broadcast %135 : vector<1x32xf32> to vector<8x32xf32>
    %137 = arith.addf %133, %136 : vector<8x32xf32>
    %c0_46 = arith.constant 0 : index
    %c0_47 = arith.constant 0 : index
    %c0_48 = arith.constant 0 : index
    %138 = vector.load %arg9[%c0_46, %c0_47, %c0_48] : memref<1x1x32xf32, #tpu.memory_space<vmem>>, vector<1x1x32xf32>
    %139 = vector.shape_cast %138 : vector<1x1x32xf32> to vector<1x32xf32>
    %c0_49 = arith.constant 0 : index
    %c0_50 = arith.constant 0 : index
    %c0_51 = arith.constant 0 : index
    %140 = vector.load %arg10[%c0_49, %c0_50, %c0_51] : memref<1x1x32xf32, #tpu.memory_space<vmem>>, vector<1x1x32xf32>
    %141 = vector.shape_cast %140 : vector<1x1x32xf32> to vector<1x32xf32>
    %cst_52 = arith.constant dense<0.000000e+00> : vector<8xf32>
    %142 = vector.multi_reduction <add>, %137, %cst_52 [1] : vector<8x32xf32> to vector<8xf32>
    %143 = vector.shape_cast %142 : vector<8xf32> to vector<8x1xf32>
    %cst_53 = arith.constant 3.200000e+01 : f32
    %144 = vector.broadcast %cst_53 : f32 to vector<8x1xf32>
    %145 = arith.divf %143, %144 : vector<8x1xf32>
    %146 = vector.broadcast %145 : vector<8x1xf32> to vector<8x32xf32>
    %147 = arith.subf %137, %146 : vector<8x32xf32>
    %148 = arith.mulf %147, %147 : vector<8x32xf32>
    %cst_54 = arith.constant dense<0.000000e+00> : vector<8xf32>
    %149 = vector.multi_reduction <add>, %148, %cst_54 [1] : vector<8x32xf32> to vector<8xf32>
    %150 = vector.shape_cast %149 : vector<8xf32> to vector<8x1xf32>
    %cst_55 = arith.constant 0.0322580636 : f32
    %151 = vector.broadcast %cst_55 : f32 to vector<8x1xf32>
    %152 = arith.mulf %150, %151 : vector<8x1xf32>
    %153 = math.sqrt %152 : vector<8x1xf32>
    %cst_56 = arith.constant 9.99999997E-7 : f32
    %154 = vector.broadcast %cst_56 : f32 to vector<8x1xf32>
    %155 = arith.addf %153, %154 : vector<8x1xf32>
    %156 = tpu.reciprocal %155 {approx = true} : vector<8x1xf32> -> vector<8x1xf32>
    %157 = vector.broadcast %139 : vector<1x32xf32> to vector<8x32xf32>
    %158 = arith.mulf %157, %147 : vector<8x32xf32>
    %159 = vector.broadcast %156 : vector<8x1xf32> to vector<8x32xf32>
    %160 = arith.mulf %158, %159 : vector<8x32xf32>
    %161 = vector.broadcast %141 : vector<1x32xf32> to vector<8x32xf32>
    %162 = arith.addf %160, %161 : vector<8x32xf32>
    %c0_57 = arith.constant 0 : index
    %c0_58 = arith.constant 0 : index
    %c0_59 = arith.constant 0 : index
    %163 = vector.load %arg11[%c0_57, %c0_58, %c0_59] : memref<1x32x64xbf16, #tpu.memory_space<vmem>>, vector<1x32x64xbf16>
    %164 = vector.shape_cast %163 : vector<1x32x64xbf16> to vector<32x64xbf16>
    %165 = arith.truncf %162 : vector<8x32xf32> to vector<8x32xbf16>
    %cst_60 = arith.constant dense<0.000000e+00> : vector<8x64xf32>
    %166 = tpu.matmul %165, %164, %cst_60 {dimension_numbers = #tpu.dot_dimension_numbers<[1], [0], [0], [1], [0, 0, 1, 1], [], []>} : vector<8x32xbf16>, vector<32x64xbf16>, vector<8x64xf32> -> vector<8x64xf32>
    %c0_61 = arith.constant 0 : index
    %c0_62 = arith.constant 0 : index
    %c0_63 = arith.constant 0 : index
    %167 = vector.load %arg12[%c0_61, %c0_62, %c0_63] : memref<1x1x64xf32, #tpu.memory_space<vmem>>, vector<1x1x64xf32>
    %168 = vector.shape_cast %167 : vector<1x1x64xf32> to vector<1x64xf32>
    %169 = vector.broadcast %168 : vector<1x64xf32> to vector<8x64xf32>
    %170 = arith.addf %166, %169 : vector<8x64xf32>
    %cst_64 = arith.constant 0.000000e+00 : f32
    %171 = vector.broadcast %cst_64 : f32 to vector<8x64xf32>
    %172 = arith.maximumf %170, %171 : vector<8x64xf32>
    %c0_65 = arith.constant 0 : index
    %c0_66 = arith.constant 0 : index
    %c0_67 = arith.constant 0 : index
    %173 = vector.load %arg13[%c0_65, %c0_66, %c0_67] : memref<1x64x32xbf16, #tpu.memory_space<vmem>>, vector<1x64x32xbf16>
    %174 = vector.shape_cast %173 : vector<1x64x32xbf16> to vector<64x32xbf16>
    %175 = arith.truncf %172 : vector<8x64xf32> to vector<8x64xbf16>
    %cst_68 = arith.constant dense<0.000000e+00> : vector<8x32xf32>
    %176 = tpu.matmul %175, %174, %cst_68 {dimension_numbers = #tpu.dot_dimension_numbers<[1], [0], [0], [1], [0, 0, 1, 1], [], []>} : vector<8x64xbf16>, vector<64x32xbf16>, vector<8x32xf32> -> vector<8x32xf32>
    %177 = arith.addf %137, %176 : vector<8x32xf32>
    %c0_69 = arith.constant 0 : index
    %c0_70 = arith.constant 0 : index
    %c0_71 = arith.constant 0 : index
    %178 = vector.load %arg14[%c0_69, %c0_70, %c0_71] : memref<1x1x32xf32, #tpu.memory_space<vmem>>, vector<1x1x32xf32>
    %179 = vector.shape_cast %178 : vector<1x1x32xf32> to vector<1x32xf32>
    %180 = vector.broadcast %179 : vector<1x32xf32> to vector<8x32xf32>
    %181 = arith.addf %177, %180 : vector<8x32xf32>
    %c0_72 = arith.constant 0 : index
    %c0_73 = arith.constant 0 : index
    %182 = vector.load %arg20[%c0_72, %c0_73] : memref<8x32xf32, #tpu.memory_space<vmem>>, vector<8x32xf32>
    tpu.vector_store %arg20[%c0_72, %c0_73], %181 {strides = array<i32>} : memref<8x32xf32, #tpu.memory_space<vmem>>, vector<8x32xf32>,
    %c1_i32 = arith.constant 1 : i32
    %183 = arith.cmpi eq, %arg1, %c1_i32 : i32
    %184 = arith.extui %183 : i1 to i32
    %c0_i32_74 = arith.constant 0 : i32
    %185 = arith.cmpi ne, %184, %c0_i32_74 : i32
    scf.if %185 {
      %186 = vector.extract_strided_slice %181 {offsets = [7, 0], sizes = [1, 32], strides = [1, 1]} : vector<8x32xf32> to vector<1x32xf32>
      %c0_75 = arith.constant 0 : index
      %c0_76 = arith.constant 0 : index
      %187 = vector.load %arg15[%c0_75, %c0_76] : memref<1x32xf32, #tpu.memory_space<vmem>>, vector<1x32xf32>
      %c0_77 = arith.constant 0 : index
      %c0_78 = arith.constant 0 : index
      %188 = vector.load %arg16[%c0_77, %c0_78] : memref<1x32xf32, #tpu.memory_space<vmem>>, vector<1x32xf32>
      %cst_79 = arith.constant dense<0.000000e+00> : vector<1xf32>
      %189 = vector.multi_reduction <add>, %186, %cst_79 [1] : vector<1x32xf32> to vector<1xf32>
      %190 = vector.shape_cast %189 : vector<1xf32> to vector<1x1xf32>
      %cst_80 = arith.constant 3.200000e+01 : f32
      %191 = vector.broadcast %cst_80 : f32 to vector<1x1xf32>
      %192 = arith.divf %190, %191 : vector<1x1xf32>
      %193 = vector.broadcast %192 : vector<1x1xf32> to vector<1x32xf32>
      %194 = arith.subf %186, %193 : vector<1x32xf32>
      %195 = arith.mulf %194, %194 : vector<1x32xf32>
      %cst_81 = arith.constant dense<0.000000e+00> : vector<1xf32>
      %196 = vector.multi_reduction <add>, %195, %cst_81 [1] : vector<1x32xf32> to vector<1xf32>
      %197 = vector.shape_cast %196 : vector<1xf32> to vector<1x1xf32>
      %cst_82 = arith.constant 0.0322580636 : f32
      %198 = vector.broadcast %cst_82 : f32 to vector<1x1xf32>
      %199 = arith.mulf %197, %198 : vector<1x1xf32>
      %200 = math.sqrt %199 : vector<1x1xf32>
      %cst_83 = arith.constant 9.99999997E-7 : f32
      %201 = vector.broadcast %cst_83 : f32 to vector<1x1xf32>
      %202 = arith.addf %200, %201 : vector<1x1xf32>
      %203 = tpu.reciprocal %202 {approx = true} : vector<1x1xf32> -> vector<1x1xf32>
      %204 = arith.mulf %187, %194 : vector<1x32xf32>
      %205 = vector.broadcast %203 : vector<1x1xf32> to vector<1x32xf32>
      %206 = arith.mulf %204, %205 : vector<1x32xf32>
      %207 = arith.addf %206, %188 : vector<1x32xf32>
      %c0_84 = arith.constant 0 : index
      %c0_85 = arith.constant 0 : index
      %208 = vector.load %arg17[%c0_84, %c0_85] : memref<32x4xbf16, #tpu.memory_space<vmem>>, vector<32x4xbf16>
      %209 = arith.truncf %207 : vector<1x32xf32> to vector<1x32xbf16>
      %cst_86 = arith.constant dense<0.000000e+00> : vector<1x4xf32>
      %210 = tpu.matmul %209, %208, %cst_86 {dimension_numbers = #tpu.dot_dimension_numbers<[1], [0], [0], [1], [0, 0, 1, 1], [], []>} : vector<1x32xbf16>, vector<32x4xbf16>, vector<1x4xf32> -> vector<1x4xf32>
      %c0_87 = arith.constant 0 : index
      %c0_88 = arith.constant 0 : index
      %211 = vector.load %arg18[%c0_87, %c0_88] : memref<1x4xf32, #tpu.memory_space<vmem>>, vector<1x4xf32>
      %212 = arith.addf %210, %211 : vector<1x4xf32>
      %cst_89 = arith.constant dense<0xFF800000> : vector<1xf32>
      %213 = vector.multi_reduction <maximumf>, %212, %cst_89 [1] : vector<1x4xf32> to vector<1xf32>
      %214 = vector.shape_cast %213 : vector<1xf32> to vector<1x1xf32>
      %215 = vector.broadcast %214 : vector<1x1xf32> to vector<1x4xf32>
      %216 = arith.subf %212, %215 : vector<1x4xf32>
      %217 = math.exp %216 : vector<1x4xf32>
      %cst_90 = arith.constant dense<0.000000e+00> : vector<1xf32>
      %218 = vector.multi_reduction <add>, %217, %cst_90 [1] : vector<1x4xf32> to vector<1xf32>
      %219 = vector.shape_cast %218 : vector<1xf32> to vector<1x1xf32>
      %220 = vector.broadcast %219 : vector<1x1xf32> to vector<1x4xf32>
      %221 = arith.divf %217, %220 : vector<1x4xf32>
      %c0_91 = arith.constant 0 : index
      %c0_92 = arith.constant 0 : index
      %c0_93 = arith.constant 0 : index
      %222 = vector.load %arg19[%c0_91, %c0_92, %c0_93] : memref<1x1x4xf32, #tpu.memory_space<vmem>>, vector<1x1x4xf32>
      %223 = vector.shape_cast %222 : vector<1x1x4xf32> to vector<1x4xf32>
      %224 = vector.shape_cast %221 : vector<1x4xf32> to vector<1x1x4xf32>
      tpu.vector_store %arg19[%c0_91, %c0_92, %c0_93], %224 {strides = array<i32>} : memref<1x1x4xf32, #tpu.memory_space<vmem>>, vector<1x1x4xf32>,
    } else {
    }
    return
  }
  func.func @transform_0(%arg0: i32, %arg1: i32) -> (i32, i32, i32) {
    %c0_i32 = arith.constant 0 : i32
    %c0_i32_0 = arith.constant 0 : i32
    %c0_i32_1 = arith.constant 0 : i32
    return %arg0, %c0_i32, %c0_i32_0 : i32, i32, i32
  }
  func.func @transform_1(%arg0: i32, %arg1: i32) -> (i32, i32, i32) {
    %c0_i32 = arith.constant 0 : i32
    %c0_i32_0 = arith.constant 0 : i32
    %c0_i32_1 = arith.constant 0 : i32
    return %arg1, %c0_i32, %c0_i32_0 : i32, i32, i32
  }
  func.func @transform_2(%arg0: i32, %arg1: i32) -> (i32, i32, i32) {
    %c0_i32 = arith.constant 0 : i32
    %c0_i32_0 = arith.constant 0 : i32
    %c0_i32_1 = arith.constant 0 : i32
    return %arg1, %c0_i32, %c0_i32_0 : i32, i32, i32
  }
  func.func @transform_3(%arg0: i32, %arg1: i32) -> (i32, i32, i32) {
    %c0_i32 = arith.constant 0 : i32
    %c0_i32_0 = arith.constant 0 : i32
    %c0_i32_1 = arith.constant 0 : i32
    return %arg1, %c0_i32, %c0_i32_0 : i32, i32, i32
  }
  func.func @transform_4(%arg0: i32, %arg1: i32) -> (i32, i32, i32) {
    %c0_i32 = arith.constant 0 : i32
    %c0_i32_0 = arith.constant 0 : i32
    %c0_i32_1 = arith.constant 0 : i32
    return %arg1, %c0_i32, %c0_i32_0 : i32, i32, i32
  }
  func.func @transform_5(%arg0: i32, %arg1: i32) -> (i32, i32, i32) {
    %c0_i32 = arith.constant 0 : i32
    %c0_i32_0 = arith.constant 0 : i32
    %c0_i32_1 = arith.constant 0 : i32
    return %arg1, %c0_i32, %c0_i32_0 : i32, i32, i32
  }
  func.func @transform_6(%arg0: i32, %arg1: i32) -> (i32, i32, i32) {
    %c0_i32 = arith.constant 0 : i32
    %c0_i32_0 = arith.constant 0 : i32
    %c0_i32_1 = arith.constant 0 : i32
    return %arg1, %c0_i32, %c0_i32_0 : i32, i32, i32
  }
  func.func @transform_7(%arg0: i32, %arg1: i32) -> (i32, i32, i32) {
    %c0_i32 = arith.constant 0 : i32
    %c0_i32_0 = arith.constant 0 : i32
    %c0_i32_1 = arith.constant 0 : i32
    return %arg1, %c0_i32, %c0_i32_0 : i32, i32, i32
  }
  func.func @transform_8(%arg0: i32, %arg1: i32) -> (i32, i32, i32) {
    %c0_i32 = arith.constant 0 : i32
    %c0_i32_0 = arith.constant 0 : i32
    %c0_i32_1 = arith.constant 0 : i32
    return %arg1, %c0_i32, %c0_i32_0 : i32, i32, i32
  }
  func.func @transform_9(%arg0: i32, %arg1: i32) -> (i32, i32, i32) {
    %c0_i32 = arith.constant 0 : i32
    %c0_i32_0 = arith.constant 0 : i32
    %c0_i32_1 = arith.constant 0 : i32
    return %arg1, %c0_i32, %c0_i32_0 : i32, i32, i32
  }
  func.func @transform_10(%arg0: i32, %arg1: i32) -> (i32, i32, i32) {
    %c0_i32 = arith.constant 0 : i32
    %c0_i32_0 = arith.constant 0 : i32
    %c0_i32_1 = arith.constant 0 : i32
    return %arg1, %c0_i32, %c0_i32_0 : i32, i32, i32
  }
  func.func @transform_11(%arg0: i32, %arg1: i32) -> (i32, i32, i32) {
    %c0_i32 = arith.constant 0 : i32
    %c0_i32_0 = arith.constant 0 : i32
    %c0_i32_1 = arith.constant 0 : i32
    return %arg1, %c0_i32, %c0_i32_0 : i32, i32, i32
  }
  func.func @transform_12(%arg0: i32, %arg1: i32) -> (i32, i32, i32) {
    %c0_i32 = arith.constant 0 : i32
    %c0_i32_0 = arith.constant 0 : i32
    %c0_i32_1 = arith.constant 0 : i32
    return %arg1, %c0_i32, %c0_i32_0 : i32, i32, i32
  }
  func.func @transform_13(%arg0: i32, %arg1: i32) -> (i32, i32) {
    %c0_i32 = arith.constant 0 : i32
    %c0_i32_0 = arith.constant 0 : i32
    %c0_i32_1 = arith.constant 0 : i32
    return %c0_i32, %c0_i32_0 : i32, i32
  }
  func.func @transform_14(%arg0: i32, %arg1: i32) -> (i32, i32) {
    %c0_i32 = arith.constant 0 : i32
    %c0_i32_0 = arith.constant 0 : i32
    %c0_i32_1 = arith.constant 0 : i32
    return %c0_i32, %c0_i32_0 : i32, i32
  }
  func.func @transform_15(%arg0: i32, %arg1: i32) -> (i32, i32) {
    %c0_i32 = arith.constant 0 : i32
    %c0_i32_0 = arith.constant 0 : i32
    %c0_i32_1 = arith.constant 0 : i32
    return %c0_i32, %c0_i32_0 : i32, i32
  }
  func.func @transform_16(%arg0: i32, %arg1: i32) -> (i32, i32) {
    %c0_i32 = arith.constant 0 : i32
    %c0_i32_0 = arith.constant 0 : i32
    %c0_i32_1 = arith.constant 0 : i32
    return %c0_i32, %c0_i32_0 : i32, i32
  }
  func.func @transform_17(%arg0: i32, %arg1: i32) -> (i32, i32, i32) {
    %c0_i32 = arith.constant 0 : i32
    %c0_i32_0 = arith.constant 0 : i32
    %c0_i32_1 = arith.constant 0 : i32
    return %arg0, %c0_i32, %c0_i32_0 : i32, i32, i32
  }
}

</mosaic_0001>

<bundles_post_ra>
// kernel: transformer_forward.1
= control target key start
LH: loop header
LB: loop body
LE: loop exit
PB: predicated region body
PF: predicated region fallthrough
CT: control target
= control target key end

     0   :  { %s2916_s0 = inlined_call_operand.vmem [shape: f32[2,8,32], index: 0, kind: input, shape index: {}]   ;;  %s2917_s1 = inlined_call_operand.vmem [shape: f32[2,1,32], index: 1, kind: input, shape index: {}]   ;;  %s2918_s2 = inlined_call_operand.vmem [shape: f32[2,1,32], index: 2, kind: input, shape index: {}]   ;;  %s2919_s3 = inlined_call_operand.vmem [shape: bf16[2,32,96], index: 3, kind: input, shape index: {}]   ;;  %s2920_s4 = inlined_call_operand.vmem [shape: f32[2,1,96], index: 4, kind: input, shape index: {}]   ;;  %s2921_s5 = inlined_call_operand.vmem [shape: bf16[2,32,32], index: 5, kind: input, shape index: {}]   ;;  %s2922_s6 = inlined_call_operand.vmem [shape: f32[2,1,32], index: 6, kind: input, shape index: {}]   ;;  %s2923_s7 = inlined_call_operand.vmem [shape: f32[2,1,32], index: 7, kind: input, shape index: {}]   ;;  %s2924_s8 = inlined_call_operand.vmem [shape: f32[2,1,32], index: 8, kind: input, shape index: {}]   ;;  %s2925_s9 = inlined_call_operand.vmem [shape: bf16[2,32,64], index: 9, kind: input, shape index: {}]   ;;  %s2926_s10 = inlined_call_operand.vmem [shape: f32[2,1,64], index: 10, kind: input, shape index: {}]   ;;  %s2927_s11 = inlined_call_operand.vmem [shape: bf16[2,64,32], index: 11, kind: input, shape index: {}]   ;;  %s2928_s12 = inlined_call_operand.vmem [shape: f32[2,1,32], index: 12, kind: input, shape index: {}]   ;;  %s2929_s13 = inlined_call_operand.vmem [shape: f32[1,32], index: 13, kind: input, shape index: {}]   ;;  %s2930_s14 = inlined_call_operand.vmem [shape: f32[1,32], index: 14, kind: input, shape index: {}]   ;;  %s2931_s15 = inlined_call_operand.vmem [shape: bf16[32,4], index: 15, kind: input, shape index: {}]   ;;  %s2932_s16 = inlined_call_operand.vmem [shape: f32[1,4], index: 16, kind: input, shape index: {}]   ;;  %s2933_s17 = inlined_call_operand.hbm [shape: f32[2,1,4], index: 17, kind: output, shape index: {}]  }
   0x1   :  { %2948 = sst [smem:[#allocation18_spill]] %s2916_s0 }
   0x2   :  { %2949 = sst [smem:[#allocation19_spill]] %s2917_s1 }
   0x3   :  { %2950 = sst [smem:[#allocation20_spill]] %s2919_s3 }
   0x4   :  { %2951 = sst [smem:[#allocation21_spill]] %s2921_s5 }
   0x5   :  { %2952 = sst [smem:[#allocation22_spill]] %s2929_s13 }
   0x6   :  { %2953 = sst [smem:[#allocation23_spill]] %s2930_s14 }
   0x7   :  { %2954 = sst [smem:[#allocation24_spill]] %s2931_s15 }
   0x8   :  { %2955 = sst [smem:[#allocation25_spill]] %s2932_s16 }
   0x9   :  { %2956 = sst [smem:[#allocation26_spill]] %s2933_s17 }
   0xa   :  { %22 = vsyncpa [#allocation4], 0 }
   0xb   :  { %24 = vsyncpa [#allocation4 + $0x1], 0  ;;  %s2567_s24 = smov 0   ;;  %s2569_s25 = smov 0  }
   0xc   :  { %s2571_s26 = smov 0   ;;  %s2573_s27 = smov 0  }
   0xd   :  { %s2575_s28 = smov 0   ;;  %s2577_s29 = smov 0  }
   0xe   :  { %s2579_s0 = smov 0   ;;  %s2581_s30 = smov 0  }
   0xf LB: > { %2957 = sst [smem:[#allocation6_spill]] %s2427_s24  ;;  %s2048_s18 = sadd.s32 4294967295, %s2455_s30   ;;  %s2455_s30 = sphi %s2581_s30, %s30_s30   ;;  %s2451_s0 = sphi %s2579_s0, %s3001_s0   ;;  %s2447_s29 = sphi %s2577_s29, %s3000_s29   ;;  %s2443_s28 = sphi %s2575_s28, %s2999_s28   ;;  %s2439_s27 = sphi %s2573_s27, %s2998_s27   ;;  %s2435_s26 = sphi %s2571_s26, %s2997_s26   ;;  %s2431_s25 = sphi %s2569_s25, %s3003_s25   ;;  %s2427_s24 = sphi %s2567_s24, %s3002_s24  }
  0x10   : > { %2958 = sst [smem:[#allocation7_spill]] %s2435_s26  ;;  %s2049_s19 = sadd.s32 4294967294, %s2455_s30  }
  0x11   : > { %2959 = sst [smem:[#allocation8_spill]] %s2439_s27  ;;  %s39_s1 = sadd.s32 1, %s2447_s29 }
  0x12   : > { %2960 = sst [smem:[#allocation9_spill]] %s2443_s28  ;;  %p40_p0 = scmp.ge.s32.totalorder %s39_s1, 2 }
  0x13   : > { %2961 = sst [smem:[#allocation10_spill]] %s2447_s29  ;;  %s42_s20 = sadd.s32 1, %s2451_s0 }
  0x14   : > { %2962 = sst [smem:[#allocation11_spill]] %s2451_s0  ;;  %p481_p1 = scmp.ne.s32.totalorder %s2435_s26, %s2431_s25 }
  0x15   : > { %2963 = sst [smem:[#allocation12_spill]] %s2455_s30  ;;  %p482_p2 = scmp.eq.s32.totalorder %s2048_s18, 3 }
  0x16   : > { %s3005_s1 = smov (%p40_p0, %s39_s1), 0  ;;  %s3007_s20 = smov (!%p40_p0, %s42_s20), %s2451_s0 }
  0x17   : > { %2964 = sst [smem:[#allocation13_spill]] %s3005_s1  ;;  %p2616_p3 = por %p482_p2, %p481_p1 }
  0x18   : > { %p487_p4 = scmp.ne.s32.totalorder %s2431_s25, %s2427_s24  ;;  %p44_p5 = scmp.ge.s32.totalorder %s3007_s20, 2 }
  0x19   : > { %s2965_s21 = scalar_select %p2616_p3, 1, 0 }
  0x1a   : > { %p488_p6 = scmp.eq.s32.totalorder %s2049_s19, 3  ;;  %p2052_p7 = scmp.ge.s32.totalorder %s2455_s30, 1 }
  0x1b   : > { %2966 = sst [smem:[#allocation14_spill]] %s2965_s21  ;;  %p605_p8 = scmp.lt.s32.totalorder %s2455_s30, 5 }
  0x1c   : > { %s3009_s20 = smov (%p44_p5, %s3007_s20), 0  ;;  %p2626_p9 = por %p488_p6, %p487_p4 }
  0x1d   : > { %2967 = sst [smem:[#allocation15_spill]] %s3009_s20  ;;  %p606_p10 = pnand %p2052_p7, %p605_p8 }
  0x1e   : > { %s2968_s22 = scalar_select %p2626_p9, 1, 0 }
  0x1f   : > { %s468_s23 = ssub.s32 %s2451_s0, %s3009_s20  ;;  %s471_s18 = sadd.s32 1, %s2435_s26 }
  0x20   : > { %2969 = sst [smem:[#allocation16_spill]] %s2968_s22  ;;  %p469_p11 = scmp.eq.s32.totalorder %s468_s23, 0 }
  0x21   : > { %609 = sbr.rel (%p606_p10) target bundleno = 4063 (0xfdf), region = 88  ;;  %p699_p12 = scmp.lt.s32.totalorder (!%p606_p10), %s2443_s28, 1 }
  0x22   : > { %s2634_s1 = scalar_select %p469_p11, %s2435_s26, %s471_s18  }
  0x23   : > { %p703_p13 = scmp.lt.s32.totalorder (!%p606_p10), %s2439_s27, 1  ;;  %s2971_s0 = sld [smem:[#allocation18_spill]] (!%p606_p10) }
  0x24   : > { %2970 = sst [smem:[#allocation17_spill]] %s2634_s1  ;;  %s2975_s13 = sand.u32 (!%p606_p10), 1, %s2431_s25  }
  0x25   : > { %s2973_s3 = sld [smem:[#allocation20_spill]] (!%p606_p10)  ;;  %s2702_s14 = scalar_lea.vmem (!%p606_p10), [#allocation3], %s2975_s13 }
  0x26   : > { %s700_s29 = scalar_select %p699_p12, %s2443_s28, 1 }
  0x27   : > { %s2641_s24 = scalar_select %p703_p13, %s2439_s27, 1 }
  0x28   : > { %s2053_s23 = sshll.u32 %s700_s29, 3  ;;  %s2974_s5 = sld [smem:[#allocation21_spill]] }
  0x29   : > { %s702_s19 = scalar_lea.vmem %s2971_s0, %s2053_s23  ;;  %s2100_s16 = sshll.u32 %s2641_s24, 4 }
  0x2a   : > { %s730_s30 = scalar_lea.vmem %s2924_s8, %s2641_s24  ;;  %s2684_s29 = scalar_lea.vmem %s2925_s9, %s2100_s16 }
  0x2b   : > { %s2658_s15 = scalar_lea.vmem %s2973_s3, %s2100_s16  ;;  %s738_s20 = scalar_lea.vmem %s2926_s10, %s2641_s24 }
  0x2c   : > { %s746_s17 = scalar_lea.vmem %s2928_s12, %s2641_s24  ;;  %s2976_s3 = sld [smem:[#allocation8_spill]] }
  0x2e   : > { %s2667_s23 = scalar_lea.vmem %s2974_s5, %s2100_s16  ;;  %s2103_s5 = sshll.u32 %s2641_s24, 5 }
  0x2f   : > { %s2698_s28 = scalar_lea.vmem %s2927_s11, %s2103_s5 }
  0x32   : > { %p2062_p0 = scmp.ne.s32.totalorder %s2976_s3, 0 }
  0x34   : > { %751 = sbr.rel (%p2062_p0) target bundleno = 59 (0x3b), region = 92 }
  0x39   : > { %v752_v0 = vld [vmem:[%s702_s19] sm:$0xff]  ;;  %vm753_vm0 = vcmask 261120  }
  0x3a   : > { %754 = vst.msk [vmem:[#allocation2] sm:$0xff] %vm753_vm0, %v752_v0 }
  0x3b PF: > { %vm758_vm1 = vcmask 261120   ;;  %v2319_v8 = vld [vmem:[%s2658_s15 + $0x8] sm:$0xff]   ;;  %v2457_v9 = vmov 0.0   ;;  %vm2458_vm2 = vmmov 0   ;;  %v2320_v10 = vld [vmem:[%s2658_s15] sm:$0xff]   ;;  %s2977_s16 = sld [smem:[#allocation19_spill]]  ;;  %s2979_s0 = scalar_lea.vmem %s2918_s2, %s2641_s24 }
  0x3c   : > { %2137 = vmatprep.subr.bf16.mxu0 %v2457_v9  ;;  %2141 = vmatprep.mubr.msk.bf16.mxu0 %vm2458_vm2, %v2457_v9  ;;  %v2064_v22 = vld [vmem:[%s2979_s0] ss:$0 sm:$0xff]  ;;  %s2980_s21 = scalar_lea.vmem %s2920_s4, %s2641_s24  ;;  %s2459_s22 = smov 96   ;;  %vm903_vm5 = vcmask 1043456   ;;  %vm899_vm6 = vcmask 64512   ;;  %vm1457_vm7 = vcmask 130048  }
  0x3d   : > { %2138 = vmatpush3.bf16.msra.mxu0 %v2319_v8  ;;  %2145 = vmatprep.subr.bf16.mxu1 %v2457_v9  ;;  %v2065_v26 = vld [vmem:[%s2980_s21] ss:$0 sm:$0xff]  ;;  %s2460_s13 = smov 80   ;;  %s2461_s3 = smov 64   ;;  %vm1459_vm8 = vcmask 195584   ;;  %vm1667_vm11 = vcmask 523264  }
  0x3e   : > { %2139 = vmatprep.subr.bf16.mxu0 %v2457_v9  ;;  %2147 = vmatprep.mubr.msk.bf16.mxu1 %vm2458_vm2, %v2457_v9  ;;  %s2462_s5 = smov 120   ;;  %s2463_s15 = smov 112  }
  0x3f   : > { %s2466_s27 = smov 104   ;;  %s2467_s18 = smov 56  }
  0x40   : > { %s2468_s0 = smov 40   ;;  %s2469_s26 = smov 48  }
  0x41   : > { %v2705_v1 = vld [vmem:[#allocation2] sm:$0xff]  ;;  %2140 = vmatpush3.bf16.msra.mxu0 %v2320_v10  ;;  %s2978_s19 = scalar_lea.vmem %s2977_s16, %s2641_s24  ;;  %s2464_s16 = smov 88  }
  0x42   : > { %v759_v2 = vsel %vm758_vm1, %v2705_v1, 0.0  ;;  %2169 = vmatprep.subr.bf16.mxu0 %v2457_v9  ;;  %v2063_v19 = vld [vmem:[%s2978_s19] ss:$0 sm:$0xff]  ;;  %s2465_s19 = smov 72   ;;  %s2470_s1 = smov 8  }
  0x43   : > { %760 = vadd.xlane.f32.xlu0 %v759_v2  ;;  %s2471_s21 = smov 16  }
  0xcc   : > { %v761_v3 = vpop.xlane.xlu0 %760 }
  0xcd   : > { %v763_v4 = vmul.f32 0.03125, %v761_v3 }
  0xcf   : > { %v764_v5 = vsub.f32 %v2705_v1, %v763_v4 }
  0xd1   : > { %v765_v6 = vmul.f32 %v764_v5, %v764_v5  ;;  %v785_v20 = vmul.f32 %v2063_v19, %v764_v5 }
  0xd3   : > { %v766_v7 = vsel %vm758_vm1, %v765_v6, 0.0 }
  0xd4   : > { %767 = vadd.xlane.f32.xlu0 %v766_v7 }
 0x15d   : > { %v768_v11 = vpop.xlane.xlu0 %767 }
 0x15e   : > { %v769_v12 = vmul.f32 0.032258064, %v768_v11 }
 0x160   : > { %2329 = vrsqrt.f32 %v769_v12  ;;  %vm772_vm3 = vcmp.eq.f32.partialorder %v769_v12, inf  ;;  %v775_v15 = vand.u32 2147483648, %v769_v12  ;;  %vm774_vm4 = vcmp.eq.f32.partialorder %v769_v12, 0.0 }
 0x16d   : > { %v2330_v13 = vpop.eup %2329 }
 0x16e   : > { %v771_v14 = vmul.f32 %v2330_v13, %v769_v12 }
 0x170   : > { %v773_v16 = vsel %vm772_vm3, %v769_v12, %v771_v14 }
 0x171   : > { %v776_v17 = vsel %vm774_vm4, %v775_v15, %v773_v16 }
 0x172   : > { %v777_v18 = vadd.f32 1e-06, %v776_v17 }
 0x174   : > { %2331 = vrcp.f32 %v777_v18 }
 0x181   : > { %v2332_v21 = vpop.eup %2331 }
 0x182   : > { %v786_v23 = vmul.f32 %v2332_v21, %v785_v20 }
 0x184   : > { %v793_v24 = vadd.f32 %v2064_v22, %v786_v23 }
 0x186   : > { %v798_v25 = vpack.c.bf16 %v793_v24, %v793_v24 }
 0x188   : > { %2142 = vmatmul.mubr.msk.bf16.vlgmr.msra.gmra.mxu0 %vm758_vm1, %v798_v25 }
 0x189   : > { %2171 = vmatprep.mubr.msk.bf16.mxu0 %vm2458_vm2, %v2457_v9 }
 0x248   : > { %v855_v27 = vpop.f32.mrf.mxu0 }
 0x249   : > { %v856_v28 = vadd.f32 %v2065_v26, %v855_v27 }
 0x24a   : > { %v2143_v29 = vpop.f32.mrf.mxu0 }
 0x24b   : > { %862 = vrot.lane.b32.xlu1 %v856_v28, %s2459_s22  ;;  %v2739_v33 = vpack.c.bf16 %v856_v28, %v856_v28  ;;  %s2472_s22 = smov 24  }
 0x24c   : > { %v858_v30 = vpop.f32.mrf.mxu0 }
 0x24e   : > { %v2144_v31 = vpop.f32.mrf.mxu0 }
 0x2bd   : > { %v863_v32 = vpop.permute.xlu1 %862 }
 0x2be   : > { %865 = vxpose.xlu1.b32.start.end [1/1] (short) (narrow) %v863_v32, 8 }
 0x2dc   : > { %1154 = vrot.lane.b32.xlu1 %v856_v28, %s2460_s13 }
 0x2e0   : > { %961 = vrot.lane.b32.xlu1 %v2739_v33, %s2461_s3  ;;  %s2981_s3 = scalar_lea.vmem %s2922_s6, %s2641_s24 }
 0x2e4   : > { %1045 = vrot.lane.b32.xlu1 %v2739_v33, %s2462_s5 }
 0x2e8   : > { %1190 = vrot.lane.b32.xlu1 %v2739_v33, %s2463_s15  ;;  %s2982_s15 = scalar_lea.vmem %s2923_s7, %s2641_s24 }
 0x33a   : > { %v881_v34 = vpop.trf.xlu1 }
 0x33b   : > { %v898_v35 = vpack.c.bf16 %v881_v34, %v881_v34 }
 0x33d   : > { %v905_v36 = vsel %vm903_vm5, %v898_v35, 0 }
 0x33e   : > { %2146 = vmatpush3.bf16.msra.mxu1 %v905_v36 }
 0x33f   : > { %2151 = vmatprep.subr.bf16.mxu1 %v2457_v9 }
 0x341   : > { %2148 = vmatmul.mubr.msk.bf16.vlgmr.msra.gmra.mxu1 %vm899_vm6, %v2739_v33 }
 0x342   : > { %2153 = vmatprep.mubr.msk.bf16.mxu1 %vm2458_vm2, %v2457_v9 }
 0x34e   : > { %v1155_v37 = vpop.permute.xlu1 %1154 }
 0x352   : > { %v962_v38 = vpop.permute.xlu1 %961 }
 0x353   : > { %v967_v39 = vsel %vm903_vm5, %v962_v38, 0 }
 0x354   : > { %2152 = vmatpush3.bf16.msra.mxu1 %v967_v39 }
 0x355   : > { %2157 = vmatprep.subr.bf16.mxu1 %v2457_v9 }
 0x356   : > { %v1046_v52 = vpop.permute.xlu1 %1045 }
 0x35a   : > { %v1191_v55 = vpop.permute.xlu1 %1190 }
 0x401   : > { %v941_v40 = vpop.f32.mrf.mxu1 }
 0x402   : > { %v947_v41 = vmul.f32 0.35355338, %v941_v40 }
 0x403   : > { %v2149_v42 = vpop.f32.mrf.mxu1 }
 0x404   : > { %v948_v43 = vsel %vm899_vm6, %v947_v41, -inf }
 0x405   : > { %949 = vmax.xlane.f32.xlu0 %v948_v43  ;;  %v944_v44 = vpop.f32.mrf.mxu1 }
 0x407   : > { %v2150_v45 = vpop.f32.mrf.mxu1 }
 0x41b   : > { %1009 = vrot.lane.b32.xlu0 %v856_v28, %s2464_s16 }
 0x48e   : > { %v950_v46 = vpop.xlane.xlu0 %949 }
 0x48f   : > { %v951_v47 = vsub.f32 %v947_v41, %v950_v46 }
 0x491   : > { %v952_v48 = vmul.f32 1.442695, %v951_v47 }
 0x492   : > { %v1010_v49 = vpop.permute.xlu0 %1009 }
 0x493   : > { %2333 = vpow2.f32 %v952_v48  ;;  %1012 = vxpose.xlu1.b32.start.end [1/1] (short) (narrow) %v1010_v49, 8 }
 0x4a0   : > { %v2334_v50 = vpop.eup %2333 }
 0x4a1   : > { %v954_v51 = vsel %vm899_vm6, %v2334_v50, 0.0 }
 0x4a2   : > { %955 = vadd.xlane.f32.xlu0 %v954_v51 }
 0x4b8   : > { %1299 = vrot.lane.b32.xlu0 %v856_v28, %s2465_s19 }
 0x4bc   : > { %1335 = vrot.lane.b32.xlu0 %v2739_v33, %s2466_s27 }
 0x4da   : > { %1157 = vxpose.xlu0.b32.start.end [1/1] (short) (narrow) %v1155_v37, 8 }
 0x50f   : > { %v1028_v56 = vpop.trf.xlu1 }
 0x510   : > { %v1044_v57 = vpack.c.bf16 %v1028_v56, %v1028_v56 }
 0x512   : > { %v1051_v61 = vsel %vm903_vm5, %v1044_v57, 0 }
 0x52b   : > { %v956_v53 = vpop.xlane.xlu0 %955 }
 0x52c   : > { %2335 = vrcp.f32 %v956_v53 }
 0x52f   : > { %v1300_v54 = vpop.permute.xlu0 %1299 }
 0x530   : > { %1302 = vxpose.xlu0.b32.start.end [1/1] (short) (narrow) %v1300_v54, 8 }
 0x533   : > { %v1336_v62 = vpop.permute.xlu0 %1335 }
 0x539   : > { %v2336_v58 = vpop.eup %2335 }
 0x53a   : > { %v958_v59 = vmul.f32 %v2336_v58, %v2334_v50 }
 0x53c   : > { %v959_v60 = vpack.c.bf16 %v958_v59, %v958_v59 }
 0x53e   : > { %2154 = vmatmul.mubr.msk.bf16.vlgmr.msra.gmra.mxu1 %vm899_vm6, %v959_v60 }
 0x53f   : > { %2158 = vmatpush3.bf16.msra.mxu1 %v1051_v61  ;;  %2159 = vmatprep.mubr.msk.bf16.mxu1 %vm2458_vm2, %v2457_v9 }
 0x540   : > { %2163 = vmatprep.subr.bf16.mxu1 %v2457_v9 }
 0x546   : > { %2160 = vmatmul.mubr.msk.bf16.vlgmr.msra.gmra.mxu1 %vm899_vm6, %v1046_v52 }
 0x547   : > { %2165 = vmatprep.mubr.msk.bf16.mxu1 %vm2458_vm2, %v2457_v9 }
 0x556   : > { %v1173_v63 = vpop.trf.xlu0 }
 0x557   : > { %v1189_v0 = vpack.c.bf16 %v1173_v63, %v1173_v63 }
 0x559   : > { %v1196_v2 = vsel %vm903_vm5, %v1189_v0, 0 }
 0x55a   : > { %2170 = vmatpush3.bf16.msra.mxu0 %v1196_v2 }
 0x55b   : > { %2181 = vmatprep.subr.bf16.mxu0 %v2457_v9 }
 0x55d   : > { %2172 = vmatmul.mubr.msk.bf16.vlgmr.msra.gmra.mxu0 %vm899_vm6, %v1191_v55 }
 0x55e   : > { %2183 = vmatprep.mubr.msk.bf16.mxu0 %vm2458_vm2, %v2457_v9 }
 0x5ac   : > { %v1318_v3 = vpop.trf.xlu0 }
 0x5ad   : > { %v1334_v4 = vpack.c.bf16 %v1318_v3, %v1318_v3  ;;  %v2321_v3 = vld [vmem:[%s2667_s23 + $0x8] sm:$0xff]  }
 0x5af   : > { %v1341_v5 = vsel %vm903_vm5, %v1334_v4, 0  ;;  %v2322_v4 = vld [vmem:[%s2667_s23] sm:$0xff]  }
 0x5b0   : > { %2182 = vmatpush3.bf16.msra.mxu0 %v1341_v5 }
 0x5b1   : > { %2193 = vmatprep.subr.bf16.mxu0 %v2457_v9 }
 0x5b3   : > { %2184 = vmatmul.mubr.msk.bf16.vlgmr.msra.gmra.mxu0 %vm899_vm6, %v1336_v62 }
 0x5b4   : > { %2197 = vmatprep.mubr.msk.bf16.mxu0 %vm2458_vm2, %v2457_v9  ;;  %2194 = vmatpush3.bf16.msra.mxu0 %v2321_v3 }
 0x5b5   : > { %2195 = vmatprep.subr.bf16.mxu0 %v2457_v9 }
 0x5b8   : > { %2196 = vmatpush3.bf16.msra.mxu0 %v2322_v4 }
 0x5b9   : > { %2209 = vmatprep.subr.bf16.mxu0 %v2457_v9 }
 0x5fe   : > { %v2773_v6 = vpop.f32.mrf.mxu1 }
 0x600   : > { %v2155_v7 = vpop.f32.mrf.mxu1 }
 0x602   : > { %v1006_v8 = vpop.f32.mrf.mxu1 }
 0x604   : > { %v2156_v10 = vpop.f32.mrf.mxu1 }
 0x606   : > { %v1087_v11 = vpop.f32.mrf.mxu1 }
 0x607   : > { %v1093_v12 = vmul.f32 0.35355338, %v1087_v11 }
 0x608   : > { %v2161_v13 = vpop.f32.mrf.mxu1 }
 0x609   : > { %v1094_v14 = vsel %vm899_vm6, %v1093_v12, -inf }
 0x60a   : > { %1095 = vmax.xlane.f32.xlu0 %v1094_v14  ;;  %v1090_v15 = vpop.f32.mrf.mxu1 }
 0x60c   : > { %v2162_v16 = vpop.f32.mrf.mxu1 }
 0x61d   : > { %v1232_v17 = vpop.f32.mrf.mxu0 }
 0x61e   : > { %v1238_v18 = vmul.f32 0.35355338, %v1232_v17 }
 0x61f   : > { %v2173_v19 = vpop.f32.mrf.mxu0 }
 0x620   : > { %v1239_v20 = vsel %vm899_vm6, %v1238_v18, -inf }
 0x621   : > { %1240 = vmax.xlane.f32.xlu1 %v1239_v20  ;;  %v1235_v21 = vpop.f32.mrf.mxu0 }
 0x623   : > { %v2174_v22 = vpop.f32.mrf.mxu0 }
 0x673   : > { %v1377_v23 = vpop.f32.mrf.mxu0 }
 0x674   : > { %v1383_v24 = vmul.f32 0.35355338, %v1377_v23  ;;  %v2080_v23 = vld [vmem:[%s2981_s3] ss:$0 sm:$0xff] }
 0x675   : > { %v2185_v25 = vpop.f32.mrf.mxu0 }
 0x676   : > { %v1384_v26 = vsel %vm899_vm6, %v1383_v24, -inf }
 0x677   : > { %1385 = vmax.xlane.f32.xlu1 %v1384_v26  ;;  %v1380_v27 = vpop.f32.mrf.mxu0 }
 0x679   : > { %v2186_v28 = vpop.f32.mrf.mxu0 }
 0x693   : > { %v1096_v29 = vpop.xlane.xlu0 %1095 }
 0x694   : > { %v1097_v30 = vsub.f32 %v1093_v12, %v1096_v29 }
 0x696   : > { %v1098_v31 = vmul.f32 1.442695, %v1097_v30 }
 0x698   : > { %2337 = vpow2.f32 %v1098_v31 }
 0x6a5   : > { %v2338_v32 = vpop.eup %2337 }
 0x6a6   : > { %v1100_v34 = vsel %vm899_vm6, %v2338_v32, 0.0 }
 0x6a7   : > { %1101 = vadd.xlane.f32.xlu0 %v1100_v34 }
 0x6aa   : > { %v1241_v35 = vpop.xlane.xlu1 %1240 }
 0x6ab   : > { %v1242_v36 = vsub.f32 %v1238_v18, %v1241_v35  ;;  %v2323_v35 = vld [vmem:[%s2684_s29 + $0x8] sm:$0xff]  }
 0x6ad   : > { %v1243_v37 = vmul.f32 1.442695, %v1242_v36  ;;  %v2324_v36 = vld [vmem:[%s2684_s29] sm:$0xff]  }
 0x6af   : > { %2339 = vpow2.f32 %v1243_v37  ;;  %v2326_v37 = vld [vmem:[%s2698_s28 + $0x10] sm:$0xff]  }
 0x6bc   : > { %v2340_v38 = vpop.eup %2339 }
 0x6bd   : > { %v1245_v39 = vsel %vm899_vm6, %v2340_v38, 0.0 }
 0x6be   : > { %1246 = vadd.xlane.f32.xlu1 %v1245_v39 }
 0x6cf   : > { %1106 = vrot.lane.b32.xlu1 %v2739_v33, %s2467_s18 }
 0x6d3   : > { %1396 = vrot.lane.b32.xlu1 %v2739_v33, %s2468_s0 }
 0x700   : > { %v1386_v40 = vpop.xlane.xlu1 %1385 }
 0x701   : > { %v1387_v41 = vsub.f32 %v1383_v24, %v1386_v40 }
 0x703   : > { %v1388_v42 = vmul.f32 1.442695, %v1387_v41 }
 0x705   : > { %2341 = vpow2.f32 %v1388_v42 }
 0x712   : > { %v2342_v43 = vpop.eup %2341 }
 0x713   : > { %v1390_v44 = vsel %vm899_vm6, %v2342_v43, 0.0 }
 0x714   : > { %1391 = vadd.xlane.f32.xlu0 %v1390_v44 }
 0x72a   : > { %1251 = vrot.lane.b32.xlu0 %v2739_v33, %s2469_s26 }
 0x730   : > { %v1102_v45 = vpop.xlane.xlu0 %1101 }
 0x731   : > { %2343 = vrcp.f32 %v1102_v45 }
 0x73e   : > { %v2344_v46 = vpop.eup %2343 }
 0x73f   : > { %v1104_v48 = vmul.f32 %v2344_v46, %v2338_v32  ;;  %v2081_v46 = vld [vmem:[%s2982_s15] ss:$0 sm:$0xff] }
 0x741   : > { %v1105_v51 = vpack.c.bf16 %v1104_v48, %v1104_v48 }
 0x747   : > { %v1247_v47 = vpop.xlane.xlu1 %1246 }
 0x748   : > { %2345 = vrcp.f32 %v1247_v47 }
 0x74b   : > { %v1107_v49 = vpop.permute.xlu1 %1106 }
 0x74c   : > { %v1112_v50 = vsel %vm903_vm5, %v1107_v49, 0  ;;  %v2082_v49 = vld [vmem:[%s730_s30] ss:$0 sm:$0xff] }
 0x74d   : > { %2164 = vmatpush3.bf16.msra.mxu1 %v1112_v50 }
 0x74e   : > { %2175 = vmatprep.subr.bf16.mxu1 %v2457_v9 }
 0x74f   : > { %v1397_v56 = vpop.permute.xlu1 %1396 }
 0x750   : > { %2166 = vmatmul.mubr.msk.bf16.vlgmr.msra.gmra.mxu1 %vm899_vm6, %v1105_v51  ;;  %v1402_v58 = vsel %vm903_vm5, %v1397_v56, 0 }
 0x751   : > { %2177 = vmatprep.mubr.msk.bf16.mxu1 %vm2458_vm2, %v2457_v9 }
 0x755   : > { %v2346_v52 = vpop.eup %2345 }
 0x756   : > { %v1249_v53 = vmul.f32 %v2346_v52, %v2340_v38 }
 0x758   : > { %v1250_v57 = vpack.c.bf16 %v1249_v53, %v1249_v53  ;;  %v2328_v53 = vld [vmem:[%s2698_s28] sm:$0xff]  }
 0x79d   : > { %v1392_v33 = vpop.xlane.xlu0 %1391 }
 0x79e   : > { %2347 = vrcp.f32 %v1392_v33  ;;  %v2327_v33 = vld [vmem:[%s2698_s28 + $0x8] sm:$0xff]  }
 0x7a1   : > { %v1252_v54 = vpop.permute.xlu0 %1251 }
 0x7a2   : > { %v1257_v55 = vsel %vm903_vm5, %v1252_v54, 0  ;;  %v2083_v54 = vld [vmem:[%s738_s20] ss:$0 sm:$0xff] }
 0x7a3   : > { %2176 = vmatpush3.bf16.msra.mxu1 %v1257_v55 }
 0x7a4   : > { %2187 = vmatprep.subr.bf16.mxu1 %v2457_v9 }
 0x7a6   : > { %2178 = vmatmul.mubr.msk.bf16.vlgmr.msra.gmra.mxu1 %vm899_vm6, %v1250_v57 }
 0x7a7   : > { %2188 = vmatpush3.bf16.msra.mxu1 %v1402_v58  ;;  %2189 = vmatprep.mubr.msk.bf16.mxu1 %vm2458_vm2, %v2457_v9 }
 0x7a8   : > { %2201 = vmatprep.subr.bf16.mxu1 %v2457_v9 }
 0x7ab   : > { %v2348_v59 = vpop.eup %2347 }
 0x7ac   : > { %v1394_v60 = vmul.f32 %v2348_v59, %v2342_v43 }
 0x7ae   : > { %v1395_v61 = vpack.c.bf16 %v1394_v60, %v1394_v60 }
 0x7b0   : > { %2190 = vmatmul.mubr.msk.bf16.vlgmr.msra.gmra.mxu1 %vm899_vm6, %v1395_v61 }
 0x7b1   : > { %2205 = vmatprep.mubr.msk.bf16.mxu1 %vm2458_vm2, %v2457_v9  ;;  %2202 = vmatpush3.bf16.msra.mxu1 %v2323_v35 }
 0x7b2   : > { %2203 = vmatprep.subr.bf16.mxu1 %v2457_v9 }
 0x7b5   : > { %2204 = vmatpush3.bf16.msra.mxu1 %v2324_v36 }
 0x810   : > { %v1148_v62 = vpop.f32.mrf.mxu1 }
 0x811   : > { %1445 = vrot.lane.b32.xlu1 %v1148_v62, %s2470_s1 }
 0x812   : > { %v2167_v63 = vpop.f32.mrf.mxu1 }
 0x814   : > { %v1151_v0 = vpop.f32.mrf.mxu1 }
 0x816   : > { %v2168_v2 = vpop.f32.mrf.mxu1 }
 0x866   : > { %v1293_v5 = vpop.f32.mrf.mxu1 }
 0x867   : > { %1449 = vrot.lane.b32.xlu0 %v1293_v5, %s2471_s21 }
 0x868   : > { %v2179_v7 = vpop.f32.mrf.mxu1 }
 0x86a   : > { %v1296_v8 = vpop.f32.mrf.mxu1 }
 0x86c   : > { %v2180_v10 = vpop.f32.mrf.mxu1 }
 0x870   : > { %v1438_v11 = vpop.f32.mrf.mxu1 }
 0x871   : > { %1453 = vrot.lane.b32.xlu1 %v1438_v11, %s2472_s22 }
 0x872   : > { %v2191_v12 = vpop.f32.mrf.mxu1 }
 0x874   : > { %v1441_v13 = vpop.f32.mrf.mxu1 }
 0x876   : > { %v2192_v14 = vpop.f32.mrf.mxu1 }
 0x883   : > { %v1446_v15 = vpop.permute.xlu1 %1445 }
 0x884   : > { %v1456_v17 = vsel %vm899_vm6, %v2773_v6, %v1446_v15 }
 0x8d9   : > { %v1450_v16 = vpop.permute.xlu0 %1449 }
 0x8da   : > { %v1458_v18 = vsel %vm1457_vm7, %v1456_v17, %v1450_v16 }
 0x8e3   : > { %v1454_v19 = vpop.permute.xlu1 %1453 }
 0x8e4   : > { %v1460_v20 = vsel %vm1459_vm8, %v1458_v18, %v1454_v19 }
 0x8e5   : > { %v1465_v21 = vpack.c.bf16 %v1460_v20, %v1460_v20 }
 0x8e7   : > { %2198 = vmatmul.mubr.msk.bf16.vlgmr.msra.gmra.mxu0 %vm758_vm1, %v1465_v21 }
 0x8e8   : > { %2217 = vmatprep.mubr.msk.bf16.mxu0 %vm2458_vm2, %v2457_v9 }
 0x9a7   : > { %v1515_v22 = vpop.f32.mrf.mxu0 }
 0x9a8   : > { %v1521_v24 = vadd.f32 %v1515_v22, %v2705_v1  ;;  %v2325_v1 = vld [vmem:[%s2698_s28 + $0x18] sm:$0xff]   ;;  %s2983_s28 = sld [smem:[#allocation8_spill]] }
 0x9a9   : > { %v2199_v6 = vpop.f32.mrf.mxu0  ;;  %2210 = vmatpush3.bf16.msra.mxu0 %v2325_v1 }
 0x9aa   : > { %v1529_v25 = vadd.f32 %v2080_v23, %v1521_v24  ;;  %2211 = vmatprep.subr.bf16.mxu0 %v2457_v9 }
 0x9ab   : > { %v1518_v26 = vpop.f32.mrf.mxu0 }
 0x9ac   : > { %v1532_v27 = vsel %vm758_vm1, %v1529_v25, 0.0 }
 0x9ad   : > { %1533 = vadd.xlane.f32.xlu0 %v1532_v27  ;;  %v2200_v28 = vpop.f32.mrf.mxu0  ;;  %2212 = vmatpush3.bf16.msra.mxu0 %v2326_v37 }
 0x9ae   : > { %2213 = vmatprep.subr.bf16.mxu0 %v2457_v9  ;;  %p2093_p1 = scmp.ne.s32.totalorder %s2983_s28, 1 }
 0x9af   : > { %s2985_s23 = sld [smem:[#allocation22_spill]] (!%p2093_p1) }
 0x9b0   : > { %s2986_s29 = sld [smem:[#allocation23_spill]] (!%p2093_p1) }
 0x9b1   : > { %2214 = vmatpush3.bf16.msra.mxu0 %v2327_v33  ;;  %s2987_s16 = sld [smem:[#allocation25_spill]] (!%p2093_p1) }
 0x9b2   : > { %2215 = vmatprep.subr.bf16.mxu0 %v2457_v9  ;;  %v2092_v9 = vld [vmem:[%s746_s17] ss:$0 sm:$0xff]  ;;  %s2984_s17 = sld [smem:[#allocation24_spill]] (!%p2093_p1) }
 0x9b5   : > { %2216 = vmatpush3.bf16.msra.mxu0 %v2328_v53 }
 0xa36   : > { %v1534_v29 = vpop.xlane.xlu0 %1533 }
 0xa37   : > { %v1535_v30 = vmul.f32 0.03125, %v1534_v29 }
 0xa39   : > { %v1536_v31 = vsub.f32 %v1529_v25, %v1535_v30 }
 0xa3b   : > { %v1537_v32 = vmul.f32 %v1536_v31, %v1536_v31  ;;  %v1557_v47 = vmul.f32 %v2081_v46, %v1536_v31 }
 0xa3d   : > { %v1538_v34 = vsel %vm758_vm1, %v1537_v32, 0.0 }
 0xa3e   : > { %1539 = vadd.xlane.f32.xlu1 %v1538_v34 }
 0xac7   : > { %v1540_v38 = vpop.xlane.xlu1 %1539 }
 0xac8   : > { %v1541_v39 = vmul.f32 0.032258064, %v1540_v38 }
 0xaca   : > { %2349 = vrsqrt.f32 %v1541_v39  ;;  %vm1544_vm9 = vcmp.eq.f32.partialorder %v1541_v39, inf  ;;  %v1547_v42 = vand.u32 2147483648, %v1541_v39  ;;  %vm1546_vm10 = vcmp.eq.f32.partialorder %v1541_v39, 0.0 }
 0xad7   : > { %v2350_v40 = vpop.eup %2349 }
 0xad8   : > { %v1543_v41 = vmul.f32 %v2350_v40, %v1541_v39 }
 0xada   : > { %v1545_v43 = vsel %vm1544_vm9, %v1541_v39, %v1543_v41 }
 0xadb   : > { %v1548_v44 = vsel %vm1546_vm10, %v1547_v42, %v1545_v43 }
 0xadc   : > { %v1549_v45 = vadd.f32 1e-06, %v1548_v44 }
 0xade   : > { %2351 = vrcp.f32 %v1549_v45 }
 0xaeb   : > { %v2352_v48 = vpop.eup %2351 }
 0xaec   : > { %v1558_v50 = vmul.f32 %v2352_v48, %v1557_v47 }
 0xaee   : > { %v1565_v51 = vadd.f32 %v2082_v49, %v1558_v50 }
 0xaf0   : > { %v1570_v52 = vpack.c.bf16 %v1565_v51, %v1565_v51 }
 0xaf2   : > { %2206 = vmatmul.mubr.msk.bf16.vlgmr.msra.gmra.mxu1 %vm758_vm1, %v1570_v52 }
 0xbb2   : > { %v1627_v55 = vpop.f32.mrf.mxu1 }
 0xbb3   : > { %v1628_v56 = vadd.f32 %v2083_v54, %v1627_v55 }
 0xbb4   : > { %v2207_v57 = vpop.f32.mrf.mxu1 }
 0xbb5   : > { %v1633_v58 = vmax.f32 %v1628_v56, 0.0 }
 0xbb6   : > { %v1630_v59 = vpop.f32.mrf.mxu1 }
 0xbb7   : > { %v1642_v60 = vpack.c.bf16 %v1633_v58, %v1633_v58 }
 0xbb8   : > { %v2208_v61 = vpop.f32.mrf.mxu1 }
 0xbb9   : > { %2218 = vmatmul.mubr.msk.bf16.vlgmr.msra.gmra.mxu0 %vm1667_vm11, %v1642_v60 }
 0xc79   : > { %v1705_v62 = vpop.f32.mrf.mxu0 }
 0xc7a   : > { %v1711_v63 = vadd.f32 %v1705_v62, %v1529_v25 }
 0xc7b   : > { %v2219_v0 = vpop.f32.mrf.mxu0  ;;  %1724 = sbr.rel (%p2093_p1) target bundleno = 4037 (0xfc5), region = 96 }
 0xc7c   : > { %v1719_v2 = vadd.f32 %v2092_v9, %v1711_v63 }
 0xc7d   : > { %v1708_v3 = vpop.f32.mrf.mxu0 }
 0xc7e   : > { %1720 = vst.msk [vmem:[#allocation2] sm:$0xff] %vm758_vm1, %v1719_v2 }
 0xc7f   : > { %v2220_v4 = vpop.f32.mrf.mxu0 }
 0xc80   : > { %vm1727_vm12 = vcmask 261127   ;;  %v2353_v13 = vld [vmem:[%s2984_s17 + $0x8] sm:$0xff]   ;;  %v2473_v14 = vmov 0.0   ;;  %vm2474_vm13 = vmmov 0   ;;  %v2354_v15 = vld [vmem:[%s2984_s17] sm:$0xff]   ;;  %v1752_v20 = vlaneseq }
 0xc81   : > { %v1728_v5 = vsel %vm1727_vm12, %v1719_v2, 0.0  ;;  %2221 = vmatprep.subr.bf16.mxu0 %v2473_v14  ;;  %2225 = vmatprep.mubr.msk.bf16.mxu0 %vm2474_vm13, %v2473_v14  ;;  %v2475_v18 = vmov 1966171168   ;;  %v1725_v36 = vld [vmem:[%s2985_s23] sm:$0x1]  ;;  %vm1836_vm0 = vcmask 24576  }
 0xc82   : > { %1729 = vadd.xlane.f32.xlu0 %v1728_v5  ;;  %2222 = vmatpush3.bf16.msra.mxu0 %v2353_v13  ;;  %v1750_v19 = vunpack.c.l.s4 %v2475_v18  ;;  %v1753_v22 = vshrl.u32 %v1752_v20, 7  ;;  %v1726_v39 = vld [vmem:[%s2986_s29] sm:$0x1] }
 0xc83   : > { %2223 = vmatprep.subr.bf16.mxu0 %v2473_v14  ;;  %v1780_v43 = vld [vmem:[%s2987_s16] sm:$0x1] }
 0xc84   : > { %v1751_v21 = vunpack.c.0.s8 %v1750_v19  ;;  %v1770_v35 = vsub.s32 7, %v1753_v22 }
 0xc86   : > { %2224 = vmatpush3.bf16.msra.mxu0 %v2354_v15  ;;  %v1754_v24 = vsub.s32 %v1751_v21, %v1753_v22 }
 0xd0b   : > { %v1730_v7 = vpop.xlane.xlu0 %1729 }
 0xd0c   : > { %v1731_v8 = vmul.f32 0.03125, %v1730_v7 }
 0xd0e   : > { %v1732_v10 = vsub.f32 %v1719_v2, %v1731_v8 }
 0xd10   : > { %v1733_v11 = vmul.f32 %v1732_v10, %v1732_v10  ;;  %v1748_v6 = vcombine.high %v1732_v10, %v1732_v10 }
 0xd12   : > { %v1734_v12 = vsel %vm1727_vm12, %v1733_v11, 0.0  ;;  %v1755_v29 = vrot.slane %v1748_v6, %v1754_v24 }
 0xd13   : > { %1735 = vadd.xlane.f32.xlu0 %v1734_v12 }
 0xd14   : > { %v1756_v31 = vcombine.high %v1755_v29, %v1755_v29 }
 0xd16   : > { %v1763_v32 = vrot.slane %v1756_v31, %v1754_v24 }
 0xd18   : > { %v1764_v34 = vcombine.high %v1763_v32, %v1763_v32 }
 0xd1a   : > { %v1766_v37 = vmul.f32 %v1764_v34, %v1725_v36 }
 0xd9c   : > { %v1736_v16 = vpop.xlane.xlu0 %1735 }
 0xd9d   : > { %v1737_v17 = vmul.f32 0.032258064, %v1736_v16 }
 0xd9f   : > { %2355 = vrsqrt.f32 %v1737_v17  ;;  %vm1740_vm14 = vcmp.eq.f32.partialorder %v1737_v17, inf  ;;  %v1743_v26 = vand.u32 2147483648, %v1737_v17  ;;  %vm1742_vm15 = vcmp.eq.f32.partialorder %v1737_v17, 0.0 }
 0xdac   : > { %v2356_v23 = vpop.eup %2355 }
 0xdad   : > { %v1739_v25 = vmul.f32 %v2356_v23, %v1737_v17 }
 0xdaf   : > { %v1741_v27 = vsel %vm1740_vm14, %v1737_v17, %v1739_v25 }
 0xdb0   : > { %v1744_v28 = vsel %vm1742_vm15, %v1743_v26, %v1741_v27 }
 0xdb1   : > { %v1745_v30 = vadd.f32 1e-06, %v1744_v28 }
 0xdb3   : > { %2357 = vrcp.f32 %v1745_v30 }
 0xdc0   : > { %v2358_v1 = vpop.eup %2357 }
 0xdc1   : > { %v1771_v38 = vrot.slane %v2358_v1, %v1770_v35 }
 0xdc3   : > { %v1773_v40 = vmul.f32 %v1771_v38, %v1766_v37 }
 0xdc5   : > { %v1774_v41 = vadd.f32 %v1773_v40, %v1726_v39 }
 0xdc7   : > { %v1779_v42 = vpack.c.bf16 %v1774_v41, %v1774_v41 }
 0xdc9   : > { %2226 = vmatmul.mubr.msk.bf16.vlgmr.msra.gmra.mxu0 %vm758_vm1, %v1779_v42 }
 0xe89   : > { %v1830_v44 = vpop.f32.mrf.mxu0 }
 0xe8a   : > { %v1831_v45 = vadd.f32 %v1830_v44, %v1780_v43 }
 0xe8b   : > { %v2227_v46 = vpop.f32.mrf.mxu0 }
 0xe8c   : > { %v1837_v47 = vsel %vm1836_vm0, %v1831_v45, -inf }
 0xe8d   : > { %1838 = vmax.xlane.f32.xlu1 %v1837_v47  ;;  %v1833_v48 = vpop.f32.mrf.mxu0 }
 0xe8f   : > { %v2228_v49 = vpop.f32.mrf.mxu0 }
 0xf16   : > { %v1839_v50 = vpop.xlane.xlu1 %1838 }
 0xf17   : > { %v1840_v51 = vsub.f32 %v1831_v45, %v1839_v50 }
 0xf19   : > { %v1841_v52 = vmul.f32 1.442695, %v1840_v51 }
 0xf1b   : > { %2359 = vpow2.f32 %v1841_v52 }
 0xf28   : > { %v2360_v33 = vpop.eup %2359 }
 0xf29   : > { %v1843_v53 = vsel %vm1836_vm0, %v2360_v33, 0.0 }
 0xf2a   : > { %1844 = vadd.xlane.f32.xlu1 %v1843_v53 }
 0xfb3   : > { %v1845_v54 = vpop.xlane.xlu1 %1844 }
 0xfb4   : > { %2361 = vrcp.f32 %v1845_v54 }
 0xfc1   : > { %v2362_v55 = vpop.eup %2361 }
 0xfc2   : > { %v1847_v56 = vmul.f32 %v2362_v55, %v2360_v33 }
 0xfc4   : > { %1848 = vst.msk [vmem:[%s2702_s14] sm:$0x1] %vm1836_vm0, %v1847_v56 }
 0xfc5 PF: > { %s2988_s19 = sld [smem:[#allocation9_spill]]  ;;  %s1862_s26 = sshll.u32 %s2702_s14, 4  ;;  %s1863_s26 = int_to_ptr.vmem [resolvable:$true] %s1862_s26 }
 0xfc6   : > { %s2990_s28 = sld [smem:[#allocation26_spill]]  ;;  %s2992_s1 = sand.u32 1, %s2431_s25  }
 0xfc7   : > { %s1850_s21 = scalar_lea.sflag [#allocation4], %s2992_s1  ;;  %s2363_s22 = scalar_lea.vmem %s1863_s26, 16 }
 0xfc8   : > { %p2364_p2 = scmp.ne.s32.totalorder %s1863_s26, %s2363_s22  ;;  %s2476_s23 = smov [#allocation3]  }
 0xfc9   : > { %s2367_s13 = sshll.u32 %s2476_s23, 4  ;;  %s2368_s13 = int_to_ptr.vmem [resolvable:$false] %s2367_s13 }
 0xfca   : > { %p2365_p4 = pnand %p2364_p2, %p2616_p3  ;;  %s2369_s3 = scalar_lea.vmem %s2368_s13, 32 }
 0xfcb   : > { %s2097_s18 = sshll.u32 %s2988_s19, 4  ;;  %p2370_p6 = scmp.lt.s32.totalorder %s1863_s26, %s2368_s13 }
 0xfcc   : > { %s2991_s20 = smov %s2990_s28  ;;  %s1860_s24 = scalar_lea.hbm %s2990_s28, %s2097_s18 }
 0xfcd   : > { %p2366_p5 = pneg %p2365_p4  ;;  %p2371_p7 = scmp.lt.s32.totalorder %s2369_s3, %s2363_s22 }
 0xfcf   : > { %p2372_p8 = por %p2371_p7, %p2370_p6 }
 0xfd1   : > { %p2373_p10 = pnand %p2372_p8, %p2366_p5 }
 0xfd3   : > { %2376 = shalt.err (!%p2373_p10)
}
 0xfd4   : > { %s2377_s29 = scalar_lea.hbm %s1860_s24, 16  ;;  %s2381_s15 = scalar_lea.hbm %s2991_s20, 32 }
 0xfd5   : > { %p2378_p11 = scmp.ne.s32.totalorder %s1860_s24, %s2377_s29  ;;  %p2382_p0 = scmp.lt.s32.totalorder %s1860_s24, %s2991_s20 }
 0xfd6   : > { %p2383_p1 = scmp.lt.s32.totalorder %s2381_s15, %s2377_s29 }
 0xfd7   : > { %p2379_p12 = pnand %p2378_p11, %p2616_p3 }
 0xfd8   : > { %p2384_p2 = por %p2383_p1, %p2382_p0 }
 0xfd9   : > { %p2380_p13 = pneg %p2379_p12 }
 0xfdb   : > { %p2385_p4 = pnand %p2384_p2, %p2380_p13 }
 0xfdd   : > { %2388 = shalt.err (!%p2385_p4)
}
 0xfde   : > { %2229 = dma.vmem_to_hbm [thread:$0]  (%p2616_p3), %s1863_s26, 16, %s1860_s24, %s1850_s21  }
 0xfdf PF: > { %s2993_s18 = sld [smem:[#allocation12_spill]] }
 0xfe0   : > { %s2994_s30 = sld [smem:[#allocation6_spill]] }
 0xfe5   : > { %p2235_p5 = scmp.ge.s32.totalorder %s2993_s18, 2 }
 0xfe6   : > { %s1874_s28 = sand.u32 1, %s2994_s30  }
 0xfe7   : > { %p2232_p6 = pnand %p2235_p5, %p2626_p9  ;;  %s1875_s1 = scalar_lea.sflag [#allocation4], %s1874_s28 }
 0xfe9   : > { %p2233_p7 = pneg %p2232_p6 }
 0xfeb   : > { %2422 = dma.done.wait (%p2233_p7), %s1875_s1, 16  }
 0xfec   : > { %2424 = vsyncadd (%p2233_p7), %s1875_s1, 4294967280  ;;  %s30_s30 = sadd.s32 1, %s2993_s18   ;;  %s2996_s22 = sld [smem:[#allocation7_spill]] }
 0xfed   : > { %p27_p8 = scmp.ge.s32.totalorder %s30_s30, 6   ;;  %s2997_s26 = sld [smem:[#allocation17_spill]] }
 0xfee   : > { %s2998_s27 = sld [smem:[#allocation10_spill]]  ;;  %s3002_s24 = smov %s2431_s25 }
 0xfef   : > { %s2999_s28 = sld [smem:[#allocation11_spill]]  ;;  %29 = sbr.rel (!%p27_p8) target bundleno = 15 (0xf), region = 167 }
 0xff0   : > { %s3000_s29 = sld [smem:[#allocation13_spill]] }
 0xff1   : > { %s3001_s0 = sld [smem:[#allocation15_spill]] }
 0xff2   : > { %s3003_s25 = smov %s2996_s22 }
 0xff4   :  { %1879 = vsyncpa [#allocation4], 1 }
 0xff5   :  { %1881 = vsyncpa [#allocation4 + $0x1], 1 }

</bundles_post_ra>
